<compile_context>
chip_gen: v6e
topology: v6e:2x2x1
jax: 0.10.0
libtpu: 0.0.40
codegen_flags: <defaults>
</compile_context>

<pallas_src>
import functools
import math

import jax
import jax.numpy as jnp
from jax.experimental import pallas as pl
from jax.experimental.pallas import tpu as pltpu

_LANE = 128


# ----------------------------------------------------------------------------
# Generation-aware VMEM budget / tile targets
# ----------------------------------------------------------------------------
def _vmem_limit_bytes():
    cap = 64 * 1024 * 1024  # conservative fallback (v7x: 64 MiB per TensorCore)
    try:
        info = pltpu.get_tpu_info()
        cap = int(getattr(info, "vmem_capacity_bytes", cap))
    except Exception:
        pass
    return max(32 * 1024 * 1024, min(96 * 1024 * 1024, (3 * cap) // 4))


_VMEM_LIMIT = _vmem_limit_bytes()
# Worst-case double-buffered footprint at tm=1024 / tn=256 / K<=4096 is ~16-20 MiB, well
# under every generation's limit (v7x: 48 MiB), so keep big tiles on all generations:
# fewer grid steps (+0.35 us each), larger DMAs, more MXU work per step.
_TM_TARGET = 1024
_K_SINGLE_PASS_MAX = 4096  # largest K in this net is 2304 -> every conv is single-pass


def _round_up(x, m):
    return (x + m - 1) // m * m


def _cdiv(a, b):
    return -(-a // b)


# ----------------------------------------------------------------------------
# Pallas kernels
# ----------------------------------------------------------------------------
def _mm_bn_1p_kernel(l_ref, r_ref, s_ref, b_ref, o_ref, *, relu):
    """Single K-pass: out = [relu](lhs @ rhs * scale + bias). No accumulator scratch."""
    y = jnp.dot(l_ref[...], r_ref[...], preferred_element_type=jnp.float32)
    y = y * s_ref[...] + b_ref[...]
    if relu:
        y = jnp.maximum(y, 0.0)
    o_ref[...] = y.astype(o_ref.dtype)


def _mm_bn_res_1p_kernel(l_ref, r_ref, s_ref, b_ref, res_ref, o_ref, *, relu):
    """Single K-pass with fused residual add."""
    y = jnp.dot(l_ref[...], r_ref[...], preferred_element_type=jnp.float32)
    y = y * s_ref[...] + b_ref[...] + res_ref[...].astype(jnp.float32)
    if relu:
        y = jnp.maximum(y, 0.0)
    o_ref[...] = y.astype(o_ref.dtype)


def _mm_bn_kernel(l_ref, r_ref, s_ref, b_ref, o_ref, acc_ref, *, relu):
    """K-reduction on grid axis 2 (only used when K > _K_SINGLE_PASS_MAX)."""
    k = pl.program_id(2)

    @pl.when(k == 0)
    def _init():
        acc_ref[...] = jnp.zeros_like(acc_ref)

    acc_ref[...] += jnp.dot(l_ref[...], r_ref[...], preferred_element_type=jnp.float32)

    @pl.when(k == pl.num_programs(2) - 1)
    def _fin():
        y = acc_ref[...] * s_ref[...] + b_ref[...]
        if relu:
            y = jnp.maximum(y, 0.0)
        o_ref[...] = y.astype(o_ref.dtype)


def _mm_bn_res_kernel(l_ref, r_ref, s_ref, b_ref, res_ref, o_ref, acc_ref, *, relu):
    k = pl.program_id(2)

    @pl.when(k == 0)
    def _init():
        acc_ref[...] = jnp.zeros_like(acc_ref)

    acc_ref[...] += jnp.dot(l_ref[...], r_ref[...], preferred_element_type=jnp.float32)

    @pl.when(k == pl.num_programs(2) - 1)
    def _fin():
        y = acc_ref[...] * s_ref[...] + b_ref[...] + res_ref[...].astype(jnp.float32)
        if relu:
            y = jnp.maximum(y, 0.0)
        o_ref[...] = y.astype(o_ref.dtype)


def _conv3x3_kernel(x_ref, w_ref, s_ref, b_ref, o_ref, acc_ref, *, dil, relu):
    """Implicit-GEMM 3x3 stride-1 conv over kh row slabs.

    x_ref : (kh, tm, Cin)  -- slab i holds x_pad[:, i*dil : i*dil+Ho, :, :], flattened over
                              (N*Ho, Wp); tm is a multiple of the padded width Wp.
    w_ref : (kh, kw, Cin, tn)
    acc_ref: (tm, tn) f32 VMEM accumulator (explicit so the 9 dots don't spill vregs).
    Rows r >= tm - (kh-1)*dil of each tile are out-of-window padding columns of the image
    (cropped by the wrapper), so only the first nv rows are computed.
    """
    kh, tm, _ = x_ref.shape
    kw = w_ref.shape[1]
    tn = o_ref.shape[1]
    nv = tm - (kh - 1) * dil  # rows whose full kw window lives inside this tile

    first = True
    for i in range(kh):
        for j in range(kw):
            xs = x_ref[i, pl.ds(j * dil, nv), :]          # (nv, Cin) bf16, static offset
            part = jnp.dot(xs, w_ref[i, j], preferred_element_type=jnp.float32)
            if first:
                acc_ref[0:nv, :] = part
                first = False
            else:
                acc_ref[0:nv, :] += part

    y = acc_ref[0:nv, :] * s_ref[...] + b_ref[...]
    if relu:
        y = jnp.maximum(y, 0.0)
    o_ref[0:nv, :] = y.astype(o_ref.dtype)
    o_ref[nv:tm, :] = jnp.zeros((tm - nv, tn), o_ref.dtype)


def _maxpool_kernel(x_ref, o_ref):
    """3x3/s2 maxpool on 3 vertical (stride-2) slabs; kw handled by in-VMEM max shifts."""
    kh, tm, C = x_ref.shape
    nv = tm - (kh - 1)
    v = x_ref[0]
    for i in range(1, kh):
        v = jnp.maximum(v, x_ref[i])                       # vertical max, (tm, C)
    h = jnp.maximum(jnp.maximum(v[0:nv, :], v[1:nv + 1, :]), v[2:nv + 2, :])
    o_ref[0:nv, :] = h.astype(o_ref.dtype)
    o_ref[nv:tm, :] = jnp.zeros((tm - nv, C), o_ref.dtype)


# ----------------------------------------------------------------------------
# im2col glue (only used for stride-2 / 7x7 convs)
# ----------------------------------------------------------------------------
def _im2col(x, kh, kw, stride, padding, dilation, pad_value=0.0):
    """x: (N,H,W,C) -> (N,Ho,Wo,kh*kw,C), window positions in (i,j) order."""
    N, H, W, C = x.shape
    Ho = (H + 2 * padding - dilation * (kh - 1) - 1) // stride + 1
    Wo = (W + 2 * padding - dilation * (kw - 1) - 1) // stride + 1
    if padding > 0:
        x = jnp.pad(
            x,
            ((0, 0), (padding, padding), (padding, padding), (0, 0)),
            constant_values=pad_value,
        )
    slabs = []
    for i in range(kh):
        for j in range(kw):
            hs = i * dilation
            ws = j * dilation
            sl = x[:, hs : hs + (Ho - 1) * stride + 1 : stride,
                      ws : ws + (Wo - 1) * stride + 1 : stride, :]
            slabs.append(sl)
    return jnp.stack(slabs, axis=3)  # (N, Ho, Wo, kh*kw, C)


# ----------------------------------------------------------------------------
# Channel padding so every kernel output is lane-dense (unmasked stores)
# ----------------------------------------------------------------------------
def _adapt_channels(cin_act, p):
    """Zero-pad weight Cin up to the activation's channel count and Cout up to 128.

    Padded output channels get scale=bias=0, so they are exactly 0 after the epilogue;
    padded input channels hit zero weight rows downstream, so real-channel results are
    bit-identical to the unpadded computation.
    """
    w, scale, bias = p["w"], p["scale"], p["bias"]
    cin_w, cout = w.shape[-2], w.shape[-1]
    if cin_act > cin_w:
        w = jnp.pad(w, [(0, 0)] * (w.ndim - 2) + [(0, cin_act - cin_w), (0, 0)])
    if cout < _LANE:
        pc = _LANE - cout
        w = jnp.pad(w, [(0, 0)] * (w.ndim - 1) + [(0, pc)])
        scale = jnp.pad(scale, (0, pc))
        bias = jnp.pad(bias, (0, pc))
    return {"w": w, "scale": scale, "bias": bias}


# ----------------------------------------------------------------------------
# Fused matmul + BN (+ residual) (+ ReLU)
# ----------------------------------------------------------------------------
def _pick_tn(cout):
    if cout % 256 == 0:
        return 256
    if cout % 128 == 0:
        return 128
    return cout


def _matmul_bn(lhs, w2d, scale, bias, *, relu, residual=None):
    """lhs (M,K) x w2d (K,Cout), fused scale/bias/residual/relu, bf16 MXU + f32 accum."""
    M, K = lhs.shape
    Cout = w2d.shape[1]
    lhs = lhs.astype(jnp.bfloat16)
    w2d = w2d.astype(jnp.bfloat16)

    tn = _pick_tn(Cout)
    tm = min(_TM_TARGET, _round_up(M, 8))
    Mp = _round_up(M, tm)

    single = K <= _K_SINGLE_PASS_MAX
    if single:
        Kp, tk, gk = K, K, 1
    else:
        Kp = _round_up(K, 512)
        tk = 512
        gk = Kp // tk

    if Mp != M:
        lhs = jnp.pad(lhs, ((0, Mp - M), (0, 0)))
    if Kp != K:
        lhs = jnp.pad(lhs, ((0, 0), (0, Kp - K)))
        w2d = jnp.pad(w2d, ((0, Kp - K), (0, 0)))

    scale = scale.reshape(1, Cout).astype(jnp.float32)
    bias = bias.reshape(1, Cout).astype(jnp.float32)

    res = None
    if residual is not None:
        res = residual.astype(jnp.bfloat16)
        if Mp != M:
            res = jnp.pad(res, ((0, Mp - M), (0, 0)))

    n_streams = 1 + (res is not None)
    cost = pl.CostEstimate(
        flops=2 * Mp * Kp * Cout,
        transcendentals=0,
        bytes_accessed=int((Mp * Kp + Kp * Cout + n_streams * Mp * Cout) * 2
                           + 2 * Cout * 4),
    )

    if single:
        # gk == 1 fast path: no f32 accumulator round trip; 2-D (m, n) grid with the
        # (tm, K) lhs block kept resident across the inner Cout sweep.
        grid = (Mp // tm, Cout // tn)
        in_specs = [
            pl.BlockSpec((tm, Kp), lambda m, n: (m, 0)),
            pl.BlockSpec((Kp, tn), lambda m, n: (0, n)),
            pl.BlockSpec((1, tn), lambda m, n: (0, n)),
            pl.BlockSpec((1, tn), lambda m, n: (0, n)),
        ]
        args = [lhs, w2d, scale, bias]
        if res is not None:
            in_specs.append(pl.BlockSpec((tm, tn), lambda m, n: (m, n)))
            args.append(res)
            kernel = functools.partial(_mm_bn_res_1p_kernel, relu=relu)
        else:
            kernel = functools.partial(_mm_bn_1p_kernel, relu=relu)
        out_spec = pl.BlockSpec((tm, tn), lambda m, n: (m, n))
        scratch = []
        dims = ("parallel", "parallel")
    else:
        grid = (Mp // tm, Cout // tn, gk)
        in_specs = [
            pl.BlockSpec((tm, tk), lambda m, n, k: (m, k)),
            pl.BlockSpec((tk, tn), lambda m, n, k: (k, n)),
            pl.BlockSpec((1, tn), lambda m, n, k: (0, n)),
            pl.BlockSpec((1, tn), lambda m, n, k: (0, n)),
        ]
        args = [lhs, w2d, scale, bias]
        if res is not None:
            in_specs.append(pl.BlockSpec((tm, tn), lambda m, n, k: (m, n)))
            args.append(res)
            kernel = functools.partial(_mm_bn_res_kernel, relu=relu)
        else:
            kernel = functools.partial(_mm_bn_kernel, relu=relu)
        out_spec = pl.BlockSpec((tm, tn), lambda m, n, k: (m, n))
        scratch = [pltpu.VMEM((tm, tn), jnp.float32)]
        dims = ("parallel", "parallel", "arbitrary")

    out = pl.pallas_call(
        kernel,
        out_shape=jax.ShapeDtypeStruct((Mp, Cout), jnp.bfloat16),
        grid=grid,
        in_specs=in_specs,
        out_specs=out_spec,
        scratch_shapes=scratch,
        compiler_params=pltpu.CompilerParams(
            dimension_semantics=dims,
            vmem_limit_bytes=_VMEM_LIMIT,
        ),
        cost_estimate=cost,
    )(*args)
    return out[:M, :]


def _conv1x1_bn(x, p, *, stride=1, relu=True, residual=None):
    """1x1 conv + BN: no im2col, direct (M, Cin) matmul."""
    p = _adapt_channels(x.shape[-1], p)
    if stride > 1:
        # TODO(synk): fold the stride-2 subsample into the lhs BlockSpec / pl.ds instead
        # of a wrapper-side strided slice (one HBM round trip per downsample).
        x = x[:, ::stride, ::stride, :]
    N, Ho, Wo, Cin = x.shape
    Cout = p["w"].shape[-1]
    lhs = x.reshape(N * Ho * Wo, Cin)
    res = None if residual is None else residual.reshape(-1, residual.shape[-1])
    out = _matmul_bn(lhs, p["w"].reshape(Cin, Cout), p["scale"], p["bias"],
                     relu=relu, residual=res)
    return out.reshape(N, Ho, Wo, Cout)


def _conv_im2col_bn(x, p, *, stride, padding, dilation, relu):
    """General conv (stem 7x7 / stride-2 3x3) via bf16 im2col + fused matmul."""
    # TODO(synk): replace the im2col patch matrix with a halo-DMA implicit GEMM
    # (pl.ANY refs + pltpu.make_async_copy) to remove the duplicated HBM traffic.
    p = _adapt_channels(x.shape[-1], p)
    kh, kw, Cin, Cout = p["w"].shape
    N = x.shape[0]
    win = _im2col(x.astype(jnp.bfloat16), kh, kw, stride, padding, dilation)
    Ho, Wo = win.shape[1], win.shape[2]
    lhs = win.reshape(N * Ho * Wo, kh * kw * Cin)
    out = _matmul_bn(lhs, p["w"].reshape(kh * kw * Cin, Cout), p["scale"], p["bias"],
                     relu=relu)
    return out.reshape(N, Ho, Wo, Cout)


def _row_slab_tiling(Hrows, Wp):
    """Pick a tile height (whole image rows) so tm = t_h*Wp is sublane-aligned."""
    t_unit = 8 // math.gcd(Wp, 8)
    t_h_max = max(1, _TM_TARGET // max(1, t_unit * Wp)) * t_unit
    n_tiles = _cdiv(Hrows, t_h_max)
    t_h = _round_up(_cdiv(Hrows, n_tiles), t_unit)
    Hrows_p = _round_up(Hrows, t_h)
    return t_h, Hrows_p


def _conv3x3_s1_bn(x, p, *, dilation, relu):
    """3x3 stride-1 'same' conv (padding == dilation) + BN via the implicit-GEMM kernel."""
    p = _adapt_channels(x.shape[-1], p)
    N, H, W, Cin = x.shape
    kh, kw, _, Cout = p["w"].shape
    d = dilation
    Ho, Wo = H, W
    Wp = Wo + 2 * d

    xpad = jnp.pad(x.astype(jnp.bfloat16), ((0, 0), (d, d), (d, d), (0, 0)))
    # kh row-slabs of the padded input (3x duplication instead of a 9x im2col).
    slabs = jnp.stack([xpad[:, i * d : i * d + Ho, :, :] for i in range(kh)], axis=0)
    Hrows = N * Ho
    slabs = slabs.reshape(kh, Hrows, Wp, Cin)

    t_h, Hrows_p = _row_slab_tiling(Hrows, Wp)
    if Hrows_p != Hrows:
        slabs = jnp.pad(slabs, ((0, 0), (0, Hrows_p - Hrows), (0, 0), (0, 0)))
    Mp = Hrows_p * Wp
    tm = t_h * Wp
    lhs = slabs.reshape(kh, Mp, Cin)

    w = p["w"].astype(jnp.bfloat16)                        # (kh, kw, Cin, Cout)
    scale = p["scale"].reshape(1, Cout).astype(jnp.float32)
    bias = p["bias"].reshape(1, Cout).astype(jnp.float32)

    tn = _pick_tn(Cout)
    gm, gn = Mp // tm, Cout // tn

    cost = pl.CostEstimate(
        flops=2 * Mp * kh * kw * Cin * Cout,
        transcendentals=0,
        bytes_accessed=int((kh * Mp * Cin + kh * kw * Cin * Cout + Mp * Cout) * 2),
    )
    out = pl.pallas_call(
        functools.partial(_conv3x3_kernel, dil=d, relu=relu),
        out_shape=jax.ShapeDtypeStruct((Mp, Cout), jnp.bfloat16),
        # M axis outermost: feeds both TensorCores even when gn == 1, and keeps the big
        # activation slab resident across the inner n sweep when gn > 1.
        grid=(gm, gn),
        in_specs=[
            pl.BlockSpec((kh, tm, Cin), lambda m, n: (0, m, 0)),
            pl.BlockSpec((kh, kw, Cin, tn), lambda m, n: (0, 0, 0, n)),
            pl.BlockSpec((1, tn), lambda m, n: (0, n)),
            pl.BlockSpec((1, tn), lambda m, n: (0, n)),
        ],
        out_specs=pl.BlockSpec((tm, tn), lambda m, n: (m, n)),
        scratch_shapes=[pltpu.VMEM((tm, tn), jnp.float32)],
        compiler_params=pltpu.CompilerParams(
            dimension_semantics=("parallel", "parallel"),
            vmem_limit_bytes=_VMEM_LIMIT,
        ),
        cost_estimate=cost,
    )(lhs, w, scale, bias)

    # TODO(synk): fold this crop into the consumer's index_map to avoid one HBM pass.
    out = out[: Hrows * Wp].reshape(N, Ho, Wp, Cout)[:, :, :Wo, :]
    return out


def maxpool_3x3_s2(x):
    """MaxPool2d(kernel_size=3, stride=2, padding=1) via 3 stride-2 vertical slabs.

    Vertical max + in-VMEM horizontal max shifts in one VPU kernel; the stride-2 width
    subsample is a wrapper-side slice.  (-inf padding is safe: every kept window contains
    at least one valid element.)
    """
    N, H, W, C = x.shape
    x = x.astype(jnp.bfloat16)
    Ho = (H - 1) // 2 + 1
    Wo = (W - 1) // 2 + 1
    Wp = W + 2
    xpad = jnp.pad(x, ((0, 0), (1, 1), (1, 1), (0, 0)),
                   constant_values=float("-inf"))
    # 3 vertical slabs with the H-stride-2 baked in: slab i row ho = xpad row 2*ho + i.
    slabs = jnp.stack([xpad[:, i : i + 2 * (Ho - 1) + 1 : 2, :, :] for i in range(3)],
                      axis=0)                               # (3, N, Ho, Wp, C)
    Hrows = N * Ho
    slabs = slabs.reshape(3, Hrows, Wp, C)

    t_h, Hrows_p = _row_slab_tiling(Hrows, Wp)
    if Hrows_p != Hrows:
        slabs = jnp.pad(slabs, ((0, 0), (0, Hrows_p - Hrows), (0, 0), (0, 0)))
    Mp = Hrows_p * Wp
    tm = t_h * Wp
    lhs = slabs.reshape(3, Mp, C)

    out = pl.pallas_call(
        _maxpool_kernel,
        out_shape=jax.ShapeDtypeStruct((Mp, C), jnp.bfloat16),
        grid=(Mp // tm,),
        in_specs=[pl.BlockSpec((3, tm, C), lambda m: (0, m, 0))],
        out_specs=pl.BlockSpec((tm, C), lambda m: (m, 0)),
        compiler_params=pltpu.CompilerParams(
            dimension_semantics=("parallel",),
            vmem_limit_bytes=_VMEM_LIMIT,
        ),
        cost_estimate=pl.CostEstimate(flops=4 * Mp * C, transcendentals=0,
                                      bytes_accessed=int(4 * Mp * C * 2)),
    )(lhs)
    out = out[: Hrows * Wp].reshape(N, Ho, Wp, C)
    # TODO(synk): move the stride-2 width subsample into the kernel's out_spec.
    return out[:, :, 0 : 2 * Wo : 2, :]


# ----------------------------------------------------------------------------
# Deterministic parameter construction (synthetic; no checkpoint loading)
# ----------------------------------------------------------------------------
class _KeyGen:
    def __init__(self, key):
        self._key = key

    def __call__(self):
        self._key, k = jax.random.split(self._key)
        return k


def make_conv_bn(gen, cin, cout, k):
    """Conv2d(cin, cout, k, bias=False) + BatchNorm2d(cout) folded (eval mode)."""
    std = math.sqrt(2.0 / (cin * k * k))
    w = jax.random.normal(gen(), (k, k, cin, cout), jnp.float32) * std
    gamma = jax.random.uniform(gen(), (cout,), jnp.float32, 0.5, 1.0)
    beta = jax.random.normal(gen(), (cout,), jnp.float32) * 0.01
    mean = jax.random.normal(gen(), (cout,), jnp.float32) * 0.01
    var = jax.random.uniform(gen(), (cout,), jnp.float32, 0.5, 1.5)
    eps = 1e-5
    scale = gamma / jnp.sqrt(var + eps)
    bias = beta - mean * scale
    return {"w": w, "scale": scale, "bias": bias}


def make_bottleneck(gen, inplanes, planes, has_down):
    p = {
        "conv1": make_conv_bn(gen, inplanes, planes, 1),
        "conv2": make_conv_bn(gen, planes, planes, 3),
        "conv3": make_conv_bn(gen, planes, planes * 4, 1),
    }
    if has_down:
        p["downsample"] = make_conv_bn(gen, inplanes, planes * 4, 1)
    return p


def init_resnet_params(key, in_channels=3, backbone="resnet101"):
    layer_blocks = {"resnet101": (3, 4, 23, 3), "resnet50": (3, 4, 6, 3)}[backbone]
    gen = _KeyGen(key)
    params = {"layer0": make_conv_bn(gen, in_channels, 64, 7)}
    inplanes = 64

    def make_layer(planes, n_blocks):
        nonlocal inplanes
        layer = []
        for b in range(n_blocks):
            layer.append(make_bottleneck(gen, inplanes, planes, has_down=(b == 0)))
            inplanes = planes * 4
        return layer

    params["layer1"] = make_layer(64, layer_blocks[0])
    params["layer2"] = make_layer(128, layer_blocks[1])
    params["layer3"] = make_layer(256, layer_blocks[2])
    params["layer4"] = make_layer(512, layer_blocks[3])
    return params


# ----------------------------------------------------------------------------
# Forward pass
# ----------------------------------------------------------------------------
def bottleneck_forward(x, p, stride, dilation):
    out = _conv1x1_bn(x, p["conv1"], stride=1, relu=True)
    if stride == 1:
        out = _conv3x3_s1_bn(out, p["conv2"], dilation=dilation, relu=True)
    else:
        out = _conv_im2col_bn(out, p["conv2"], stride=stride, padding=dilation,
                              dilation=dilation, relu=True)
    if "downsample" in p:
        identity = _conv1x1_bn(x, p["downsample"], stride=stride, relu=False)
    else:
        identity = x
    # conv3 + BN + residual add + final ReLU fused in one kernel
    out = _conv1x1_bn(out, p["conv3"], stride=1, relu=True, residual=identity)
    return out


def resnet_forward(params, x_nchw, output_stride=16):
    """Matches ResNet.forward: returns (x, low_level_features), both NCHW float32."""
    if output_stride == 16:
        s3, s4, d3, d4 = 2, 1, 1, 2
    elif output_stride == 8:
        s3, s4, d3, d4 = 1, 1, 2, 4
    else:
        raise ValueError(output_stride)

    x = jnp.transpose(x_nchw, (0, 2, 3, 1)).astype(jnp.bfloat16)  # NCHW -> NHWC
    # layer0: Conv7x7/s2 + BN + ReLU + MaxPool3x3/s2
    x = _conv_im2col_bn(x, params["layer0"], stride=2, padding=3, dilation=1, relu=True)
    x = maxpool_3x3_s2(x)

    low = None
    for name, stride, dil in (("layer1", 1, 1), ("layer2", 2, 1),
                              ("layer3", s3, d3), ("layer4", s4, d4)):
        for b, blk in enumerate(params[name]):
            x = bottleneck_forward(x, blk, stride if b == 0 else 1, dil)
        if name == "layer1":
            low = x

    return (jnp.transpose(x, (0, 3, 1, 2)).astype(jnp.float32),
            jnp.transpose(low, (0, 3, 1, 2)).astype(jnp.float32))


# ----------------------------------------------------------------------------
# Pure-lax reference for spot-checking individual fused kernels
# ----------------------------------------------------------------------------
def _ref_conv_bn(x, p, *, stride, padding, dilation, relu, residual=None):
    xf = x.astype(jnp.bfloat16).astype(jnp.float32)
    wf = p["w"].astype(jnp.bfloat16).astype(jnp.float32)
    y = jax.lax.conv_general_dilated(
        xf, wf, window_strides=(stride, stride),
        padding=[(padding, padding), (padding, padding)],
        rhs_dilation=(dilation, dilation),
        dimension_numbers=("NHWC", "HWIO", "NHWC"))
    y = y * p["scale"].reshape(1, 1, 1, -1) + p["bias"].reshape(1, 1, 1, -1)
    if residual is not None:
        y = y + residual.astype(jnp.float32)
    if relu:
        y = jnp.maximum(y, 0.0)
    return y


# ----------------------------------------------------------------------------
if __name__ == "__main__":
    key = jax.random.PRNGKey(0)
    kp, kx = jax.random.split(key)

    # --- spot-check each Pallas path against a lax reference (bf16 tolerances) ---
    kc1, kc2, kc3 = jax.random.split(jax.random.PRNGKey(1), 3)
    gen = _KeyGen(kc1)
    xt = jax.random.normal(kc2, (2, 6, 6, 32), jnp.float32).astype(jnp.bfloat16)

    p3 = make_conv_bn(gen, 32, 64, 3)
    got = _conv3x3_s1_bn(xt, p3, dilation=2, relu=True)[..., :64].astype(jnp.float32)
    want = _ref_conv_bn(xt, p3, stride=1, padding=2, dilation=2, relu=True)
    assert jnp.allclose(got, want, atol=3e-2, rtol=3e-2)

    got = _conv_im2col_bn(xt, p3, stride=2, padding=1, dilation=1,
                          relu=False)[..., :64].astype(jnp.float32)
    want = _ref_conv_bn(xt, p3, stride=2, padding=1, dilation=1, relu=False)
    assert jnp.allclose(got, want, atol=3e-2, rtol=3e-2)

    p1 = make_conv_bn(gen, 32, 128, 1)
    res = jax.random.normal(kc3, (2, 6, 6, 128), jnp.float32).astype(jnp.bfloat16)
    got = _conv1x1_bn(xt, p1, stride=1, relu=True, residual=res).astype(jnp.float32)
    want = _ref_conv_bn(xt, p1, stride=1, padding=0, dilation=1, relu=True, residual=res)
    assert jnp.allclose(got, want, atol=3e-2, rtol=3e-2)

    got = maxpool_3x3_s2(xt).astype(jnp.float32)
    want = jax.lax.reduce_window(xt.astype(jnp.float32), -jnp.inf, jax.lax.max,
                                 (1, 3, 3, 1), (1, 2, 2, 1),
                                 [(0, 0), (1, 1), (1, 1), (0, 0)])
    assert jnp.allclose(got, want, atol=3e-2, rtol=3e-2)

    # --- full backbone ---
    params = init_resnet_params(kp, in_channels=3, backbone="resnet101")
    x = jax.random.normal(kx, (2, 3, 64, 64), jnp.float32)

    fwd = jax.jit(resnet_forward)
    out, low = jax.block_until_ready(fwd(params, x))

    # output_stride=16: 64 -> 4 ; low-level features from layer1 at stride 4: 64 -> 16
    assert out.shape == (2, 2048, 4, 4), out.shape
    assert low.shape == (2, 256, 16, 16), low.shape
    assert jnp.isfinite(out).all() and jnp.isfinite(low).all()
    print("KERNEL_OK")
</pallas_src>

<mosaic_0001>
module attributes {stable_mosaic.version = 11 : i64} {
  func.func @_conv3x3_kernel(%arg0: i32, %arg1: i32, %arg2: memref<3x120x32xbf16, #tpu.memory_space<vmem>>, %arg3: memref<3x3x32x128xbf16, #tpu.memory_space<vmem>>, %arg4: memref<1x128xf32, #tpu.memory_space<vmem>>, %arg5: memref<1x128xf32, #tpu.memory_space<vmem>>, %arg6: memref<120x128xbf16, #tpu.memory_space<vmem>>, %arg7: memref<120x128xf32, #tpu.memory_space<vmem>>) attributes {dimension_semantics = [#tpu.dimension_semantics<parallel>, #tpu.dimension_semantics<parallel>], iteration_bounds = array<i64: 1, 1>, scalar_prefetch = 0 : i64, scratch_operands = 1 : i64, tpu.core_type = #tpu.core_type<tc>, window_params = [{transform_indices = @transform_0, window_bounds = array<i64: 3, 120, 32>}, {transform_indices = @transform_1, window_bounds = array<i64: 3, 3, 32, 128>}, {transform_indices = @transform_2, window_bounds = array<i64: 1, 128>}, {transform_indices = @transform_3, window_bounds = array<i64: 1, 128>}, {transform_indices = @transform_4, window_bounds = array<i64: 120, 128>}]} {
    %c0 = arith.constant 0 : index
    %c0_0 = arith.constant 0 : index
    %c0_1 = arith.constant 0 : index
    %0 = vector.load %arg2[%c0, %c0_0, %c0_1] : memref<3x120x32xbf16, #tpu.memory_space<vmem>>, vector<1x116x32xbf16>
    %1 = vector.shape_cast %0 : vector<1x116x32xbf16> to vector<116x32xbf16>
    %c0_2 = arith.constant 0 : index
    %c0_3 = arith.constant 0 : index
    %c0_4 = arith.constant 0 : index
    %c0_5 = arith.constant 0 : index
    %2 = vector.load %arg3[%c0_2, %c0_3, %c0_4, %c0_5] : memref<3x3x32x128xbf16, #tpu.memory_space<vmem>>, vector<1x1x32x128xbf16>
    %3 = vector.shape_cast %2 : vector<1x1x32x128xbf16> to vector<32x128xbf16>
    %cst = arith.constant dense<0.000000e+00> : vector<116x128xf32>
    %4 = tpu.matmul %1, %3, %cst {dimension_numbers = #tpu.dot_dimension_numbers<[1], [0], [0], [1], [0, 0, 1, 1], [], []>} : vector<116x32xbf16>, vector<32x128xbf16>, vector<116x128xf32> -> vector<116x128xf32>
    %c0_6 = arith.constant 0 : index
    %c0_7 = arith.constant 0 : index
    %5 = vector.load %arg7[%c0_6, %c0_7] : memref<120x128xf32, #tpu.memory_space<vmem>>, vector<116x128xf32>
    tpu.vector_store %arg7[%c0_6, %c0_7], %4 {strides = array<i32>} : memref<120x128xf32, #tpu.memory_space<vmem>>, vector<116x128xf32>,
    %c0_8 = arith.constant 0 : index
    %c2 = arith.constant 2 : index
    %c0_9 = arith.constant 0 : index
    %6 = vector.load %arg2[%c0_8, %c2, %c0_9] : memref<3x120x32xbf16, #tpu.memory_space<vmem>>, vector<1x116x32xbf16>
    %7 = vector.shape_cast %6 : vector<1x116x32xbf16> to vector<116x32xbf16>
    %c0_10 = arith.constant 0 : index
    %c1 = arith.constant 1 : index
    %c0_11 = arith.constant 0 : index
    %c0_12 = arith.constant 0 : index
    %8 = vector.load %arg3[%c0_10, %c1, %c0_11, %c0_12] : memref<3x3x32x128xbf16, #tpu.memory_space<vmem>>, vector<1x1x32x128xbf16>
    %9 = vector.shape_cast %8 : vector<1x1x32x128xbf16> to vector<32x128xbf16>
    %cst_13 = arith.constant dense<0.000000e+00> : vector<116x128xf32>
    %10 = tpu.matmul %7, %9, %cst_13 {dimension_numbers = #tpu.dot_dimension_numbers<[1], [0], [0], [1], [0, 0, 1, 1], [], []>} : vector<116x32xbf16>, vector<32x128xbf16>, vector<116x128xf32> -> vector<116x128xf32>
    %c0_14 = arith.constant 0 : index
    %c0_15 = arith.constant 0 : index
    %11 = vector.load %arg7[%c0_14, %c0_15] : memref<120x128xf32, #tpu.memory_space<vmem>>, vector<116x128xf32>
    %12 = arith.addf %11, %10 : vector<116x128xf32>
    %c0_16 = arith.constant 0 : index
    %c0_17 = arith.constant 0 : index
    %13 = vector.load %arg7[%c0_16, %c0_17] : memref<120x128xf32, #tpu.memory_space<vmem>>, vector<116x128xf32>
    tpu.vector_store %arg7[%c0_16, %c0_17], %12 {strides = array<i32>} : memref<120x128xf32, #tpu.memory_space<vmem>>, vector<116x128xf32>,
    %c0_18 = arith.constant 0 : index
    %c4 = arith.constant 4 : index
    %c0_19 = arith.constant 0 : index
    %14 = vector.load %arg2[%c0_18, %c4, %c0_19] : memref<3x120x32xbf16, #tpu.memory_space<vmem>>, vector<1x116x32xbf16>
    %15 = vector.shape_cast %14 : vector<1x116x32xbf16> to vector<116x32xbf16>
    %c0_20 = arith.constant 0 : index
    %c2_21 = arith.constant 2 : index
    %c0_22 = arith.constant 0 : index
    %c0_23 = arith.constant 0 : index
    %16 = vector.load %arg3[%c0_20, %c2_21, %c0_22, %c0_23] : memref<3x3x32x128xbf16, #tpu.memory_space<vmem>>, vector<1x1x32x128xbf16>
    %17 = vector.shape_cast %16 : vector<1x1x32x128xbf16> to vector<32x128xbf16>
    %cst_24 = arith.constant dense<0.000000e+00> : vector<116x128xf32>
    %18 = tpu.matmul %15, %17, %cst_24 {dimension_numbers = #tpu.dot_dimension_numbers<[1], [0], [0], [1], [0, 0, 1, 1], [], []>} : vector<116x32xbf16>, vector<32x128xbf16>, vector<116x128xf32> -> vector<116x128xf32>
    %c0_25 = arith.constant 0 : index
    %c0_26 = arith.constant 0 : index
    %19 = vector.load %arg7[%c0_25, %c0_26] : memref<120x128xf32, #tpu.memory_space<vmem>>, vector<116x128xf32>
    %20 = arith.addf %19, %18 : vector<116x128xf32>
    %c0_27 = arith.constant 0 : index
    %c0_28 = arith.constant 0 : index
    %21 = vector.load %arg7[%c0_27, %c0_28] : memref<120x128xf32, #tpu.memory_space<vmem>>, vector<116x128xf32>
    tpu.vector_store %arg7[%c0_27, %c0_28], %20 {strides = array<i32>} : memref<120x128xf32, #tpu.memory_space<vmem>>, vector<116x128xf32>,
    %c1_29 = arith.constant 1 : index
    %c0_30 = arith.constant 0 : index
    %c0_31 = arith.constant 0 : index
    %22 = vector.load %arg2[%c1_29, %c0_30, %c0_31] : memref<3x120x32xbf16, #tpu.memory_space<vmem>>, vector<1x116x32xbf16>
    %23 = vector.shape_cast %22 : vector<1x116x32xbf16> to vector<116x32xbf16>
    %c1_32 = arith.constant 1 : index
    %c0_33 = arith.constant 0 : index
    %c0_34 = arith.constant 0 : index
    %c0_35 = arith.constant 0 : index
    %24 = vector.load %arg3[%c1_32, %c0_33, %c0_34, %c0_35] : memref<3x3x32x128xbf16, #tpu.memory_space<vmem>>, vector<1x1x32x128xbf16>
    %25 = vector.shape_cast %24 : vector<1x1x32x128xbf16> to vector<32x128xbf16>
    %cst_36 = arith.constant dense<0.000000e+00> : vector<116x128xf32>
    %26 = tpu.matmul %23, %25, %cst_36 {dimension_numbers = #tpu.dot_dimension_numbers<[1], [0], [0], [1], [0, 0, 1, 1], [], []>} : vector<116x32xbf16>, vector<32x128xbf16>, vector<116x128xf32> -> vector<116x128xf32>
    %c0_37 = arith.constant 0 : index
    %c0_38 = arith.constant 0 : index
    %27 = vector.load %arg7[%c0_37, %c0_38] : memref<120x128xf32, #tpu.memory_space<vmem>>, vector<116x128xf32>
    %28 = arith.addf %27, %26 : vector<116x128xf32>
    %c0_39 = arith.constant 0 : index
    %c0_40 = arith.constant 0 : index
    %29 = vector.load %arg7[%c0_39, %c0_40] : memref<120x128xf32, #tpu.memory_space<vmem>>, vector<116x128xf32>
    tpu.vector_store %arg7[%c0_39, %c0_40], %28 {strides = array<i32>} : memref<120x128xf32, #tpu.memory_space<vmem>>, vector<116x128xf32>,
    %c1_41 = arith.constant 1 : index
    %c2_42 = arith.constant 2 : index
    %c0_43 = arith.constant 0 : index
    %30 = vector.load %arg2[%c1_41, %c2_42, %c0_43] : memref<3x120x32xbf16, #tpu.memory_space<vmem>>, vector<1x116x32xbf16>
    %31 = vector.shape_cast %30 : vector<1x116x32xbf16> to vector<116x32xbf16>
    %c1_44 = arith.constant 1 : index
    %c1_45 = arith.constant 1 : index
    %c0_46 = arith.constant 0 : index
    %c0_47 = arith.constant 0 : index
    %32 = vector.load %arg3[%c1_44, %c1_45, %c0_46, %c0_47] : memref<3x3x32x128xbf16, #tpu.memory_space<vmem>>, vector<1x1x32x128xbf16>
    %33 = vector.shape_cast %32 : vector<1x1x32x128xbf16> to vector<32x128xbf16>
    %cst_48 = arith.constant dense<0.000000e+00> : vector<116x128xf32>
    %34 = tpu.matmul %31, %33, %cst_48 {dimension_numbers = #tpu.dot_dimension_numbers<[1], [0], [0], [1], [0, 0, 1, 1], [], []>} : vector<116x32xbf16>, vector<32x128xbf16>, vector<116x128xf32> -> vector<116x128xf32>
    %c0_49 = arith.constant 0 : index
    %c0_50 = arith.constant 0 : index
    %35 = vector.load %arg7[%c0_49, %c0_50] : memref<120x128xf32, #tpu.memory_space<vmem>>, vector<116x128xf32>
    %36 = arith.addf %35, %34 : vector<116x128xf32>
    %c0_51 = arith.constant 0 : index
    %c0_52 = arith.constant 0 : index
    %37 = vector.load %arg7[%c0_51, %c0_52] : memref<120x128xf32, #tpu.memory_space<vmem>>, vector<116x128xf32>
    tpu.vector_store %arg7[%c0_51, %c0_52], %36 {strides = array<i32>} : memref<120x128xf32, #tpu.memory_space<vmem>>, vector<116x128xf32>,
    %c1_53 = arith.constant 1 : index
    %c4_54 = arith.constant 4 : index
    %c0_55 = arith.constant 0 : index
    %38 = vector.load %arg2[%c1_53, %c4_54, %c0_55] : memref<3x120x32xbf16, #tpu.memory_space<vmem>>, vector<1x116x32xbf16>
    %39 = vector.shape_cast %38 : vector<1x116x32xbf16> to vector<116x32xbf16>
    %c1_56 = arith.constant 1 : index
    %c2_57 = arith.constant 2 : index
    %c0_58 = arith.constant 0 : index
    %c0_59 = arith.constant 0 : index
    %40 = vector.load %arg3[%c1_56, %c2_57, %c0_58, %c0_59] : memref<3x3x32x128xbf16, #tpu.memory_space<vmem>>, vector<1x1x32x128xbf16>
    %41 = vector.shape_cast %40 : vector<1x1x32x128xbf16> to vector<32x128xbf16>
    %cst_60 = arith.constant dense<0.000000e+00> : vector<116x128xf32>
    %42 = tpu.matmul %39, %41, %cst_60 {dimension_numbers = #tpu.dot_dimension_numbers<[1], [0], [0], [1], [0, 0, 1, 1], [], []>} : vector<116x32xbf16>, vector<32x128xbf16>, vector<116x128xf32> -> vector<116x128xf32>
    %c0_61 = arith.constant 0 : index
    %c0_62 = arith.constant 0 : index
    %43 = vector.load %arg7[%c0_61, %c0_62] : memref<120x128xf32, #tpu.memory_space<vmem>>, vector<116x128xf32>
    %44 = arith.addf %43, %42 : vector<116x128xf32>
    %c0_63 = arith.constant 0 : index
    %c0_64 = arith.constant 0 : index
    %45 = vector.load %arg7[%c0_63, %c0_64] : memref<120x128xf32, #tpu.memory_space<vmem>>, vector<116x128xf32>
    tpu.vector_store %arg7[%c0_63, %c0_64], %44 {strides = array<i32>} : memref<120x128xf32, #tpu.memory_space<vmem>>, vector<116x128xf32>,
    %c2_65 = arith.constant 2 : index
    %c0_66 = arith.constant 0 : index
    %c0_67 = arith.constant 0 : index
    %46 = vector.load %arg2[%c2_65, %c0_66, %c0_67] : memref<3x120x32xbf16, #tpu.memory_space<vmem>>, vector<1x116x32xbf16>
    %47 = vector.shape_cast %46 : vector<1x116x32xbf16> to vector<116x32xbf16>
    %c2_68 = arith.constant 2 : index
    %c0_69 = arith.constant 0 : index
    %c0_70 = arith.constant 0 : index
    %c0_71 = arith.constant 0 : index
    %48 = vector.load %arg3[%c2_68, %c0_69, %c0_70, %c0_71] : memref<3x3x32x128xbf16, #tpu.memory_space<vmem>>, vector<1x1x32x128xbf16>
    %49 = vector.shape_cast %48 : vector<1x1x32x128xbf16> to vector<32x128xbf16>
    %cst_72 = arith.constant dense<0.000000e+00> : vector<116x128xf32>
    %50 = tpu.matmul %47, %49, %cst_72 {dimension_numbers = #tpu.dot_dimension_numbers<[1], [0], [0], [1], [0, 0, 1, 1], [], []>} : vector<116x32xbf16>, vector<32x128xbf16>, vector<116x128xf32> -> vector<116x128xf32>
    %c0_73 = arith.constant 0 : index
    %c0_74 = arith.constant 0 : index
    %51 = vector.load %arg7[%c0_73, %c0_74] : memref<120x128xf32, #tpu.memory_space<vmem>>, vector<116x128xf32>
    %52 = arith.addf %51, %50 : vector<116x128xf32>
    %c0_75 = arith.constant 0 : index
    %c0_76 = arith.constant 0 : index
    %53 = vector.load %arg7[%c0_75, %c0_76] : memref<120x128xf32, #tpu.memory_space<vmem>>, vector<116x128xf32>
    tpu.vector_store %arg7[%c0_75, %c0_76], %52 {strides = array<i32>} : memref<120x128xf32, #tpu.memory_space<vmem>>, vector<116x128xf32>,
    %c2_77 = arith.constant 2 : index
    %c2_78 = arith.constant 2 : index
    %c0_79 = arith.constant 0 : index
    %54 = vector.load %arg2[%c2_77, %c2_78, %c0_79] : memref<3x120x32xbf16, #tpu.memory_space<vmem>>, vector<1x116x32xbf16>
    %55 = vector.shape_cast %54 : vector<1x116x32xbf16> to vector<116x32xbf16>
    %c2_80 = arith.constant 2 : index
    %c1_81 = arith.constant 1 : index
    %c0_82 = arith.constant 0 : index
    %c0_83 = arith.constant 0 : index
    %56 = vector.load %arg3[%c2_80, %c1_81, %c0_82, %c0_83] : memref<3x3x32x128xbf16, #tpu.memory_space<vmem>>, vector<1x1x32x128xbf16>
    %57 = vector.shape_cast %56 : vector<1x1x32x128xbf16> to vector<32x128xbf16>
    %cst_84 = arith.constant dense<0.000000e+00> : vector<116x128xf32>
    %58 = tpu.matmul %55, %57, %cst_84 {dimension_numbers = #tpu.dot_dimension_numbers<[1], [0], [0], [1], [0, 0, 1, 1], [], []>} : vector<116x32xbf16>, vector<32x128xbf16>, vector<116x128xf32> -> vector<116x128xf32>
    %c0_85 = arith.constant 0 : index
    %c0_86 = arith.constant 0 : index
    %59 = vector.load %arg7[%c0_85, %c0_86] : memref<120x128xf32, #tpu.memory_space<vmem>>, vector<116x128xf32>
    %60 = arith.addf %59, %58 : vector<116x128xf32>
    %c0_87 = arith.constant 0 : index
    %c0_88 = arith.constant 0 : index
    %61 = vector.load %arg7[%c0_87, %c0_88] : memref<120x128xf32, #tpu.memory_space<vmem>>, vector<116x128xf32>
    tpu.vector_store %arg7[%c0_87, %c0_88], %60 {strides = array<i32>} : memref<120x128xf32, #tpu.memory_space<vmem>>, vector<116x128xf32>,
    %c2_89 = arith.constant 2 : index
    %c4_90 = arith.constant 4 : index
    %c0_91 = arith.constant 0 : index
    %62 = vector.load %arg2[%c2_89, %c4_90, %c0_91] : memref<3x120x32xbf16, #tpu.memory_space<vmem>>, vector<1x116x32xbf16>
    %63 = vector.shape_cast %62 : vector<1x116x32xbf16> to vector<116x32xbf16>
    %c2_92 = arith.constant 2 : index
    %c2_93 = arith.constant 2 : index
    %c0_94 = arith.constant 0 : index
    %c0_95 = arith.constant 0 : index
    %64 = vector.load %arg3[%c2_92, %c2_93, %c0_94, %c0_95] : memref<3x3x32x128xbf16, #tpu.memory_space<vmem>>, vector<1x1x32x128xbf16>
    %65 = vector.shape_cast %64 : vector<1x1x32x128xbf16> to vector<32x128xbf16>
    %cst_96 = arith.constant dense<0.000000e+00> : vector<116x128xf32>
    %66 = tpu.matmul %63, %65, %cst_96 {dimension_numbers = #tpu.dot_dimension_numbers<[1], [0], [0], [1], [0, 0, 1, 1], [], []>} : vector<116x32xbf16>, vector<32x128xbf16>, vector<116x128xf32> -> vector<116x128xf32>
    %c0_97 = arith.constant 0 : index
    %c0_98 = arith.constant 0 : index
    %67 = vector.load %arg7[%c0_97, %c0_98] : memref<120x128xf32, #tpu.memory_space<vmem>>, vector<116x128xf32>
    %68 = arith.addf %67, %66 : vector<116x128xf32>
    %c0_99 = arith.constant 0 : index
    %c0_100 = arith.constant 0 : index
    %69 = vector.load %arg7[%c0_99, %c0_100] : memref<120x128xf32, #tpu.memory_space<vmem>>, vector<116x128xf32>
    tpu.vector_store %arg7[%c0_99, %c0_100], %68 {strides = array<i32>} : memref<120x128xf32, #tpu.memory_space<vmem>>, vector<116x128xf32>,
    %c0_101 = arith.constant 0 : index
    %c0_102 = arith.constant 0 : index
    %70 = vector.load %arg7[%c0_101, %c0_102] : memref<120x128xf32, #tpu.memory_space<vmem>>, vector<116x128xf32>
    %c0_103 = arith.constant 0 : index
    %c0_104 = arith.constant 0 : index
    %71 = vector.load %arg4[%c0_103, %c0_104] : memref<1x128xf32, #tpu.memory_space<vmem>>, vector<1x128xf32>
    %72 = vector.broadcast %71 : vector<1x128xf32> to vector<116x128xf32>
    %73 = arith.mulf %70, %72 : vector<116x128xf32>
    %c0_105 = arith.constant 0 : index
    %c0_106 = arith.constant 0 : index
    %74 = vector.load %arg5[%c0_105, %c0_106] : memref<1x128xf32, #tpu.memory_space<vmem>>, vector<1x128xf32>
    %75 = vector.broadcast %74 : vector<1x128xf32> to vector<116x128xf32>
    %76 = arith.addf %73, %75 : vector<116x128xf32>
    %cst_107 = arith.constant 0.000000e+00 : f32
    %77 = vector.broadcast %cst_107 : f32 to vector<116x128xf32>
    %78 = arith.maximumf %76, %77 : vector<116x128xf32>
    %79 = arith.truncf %78 : vector<116x128xf32> to vector<116x128xbf16>
    %c0_108 = arith.constant 0 : index
    %c0_109 = arith.constant 0 : index
    %80 = vector.load %arg6[%c0_108, %c0_109] : memref<120x128xbf16, #tpu.memory_space<vmem>>, vector<116x128xbf16>
    tpu.vector_store %arg6[%c0_108, %c0_109], %79 {strides = array<i32>} : memref<120x128xbf16, #tpu.memory_space<vmem>>, vector<116x128xbf16>,
    %cst_110 = arith.constant 0.000000e+00 : bf16
    %81 = vector.broadcast %cst_110 : bf16 to vector<4x128xbf16>
    %c116 = arith.constant 116 : index
    %c0_111 = arith.constant 0 : index
    %82 = vector.load %arg6[%c116, %c0_111] : memref<120x128xbf16, #tpu.memory_space<vmem>>, vector<4x128xbf16>
    tpu.vector_store %arg6[%c116, %c0_111], %81 {strides = array<i32>} : memref<120x128xbf16, #tpu.memory_space<vmem>>, vector<4x128xbf16>,
    return
  }
  func.func @transform_0(%arg0: i32, %arg1: i32) -> (i32, i32, i32) {
    %c0_i32 = arith.constant 0 : i32
    %c0_i32_0 = arith.constant 0 : i32
    %c0_i32_1 = arith.constant 0 : i32
    return %c0_i32, %arg0, %c0_i32_0 : i32, i32, i32
  }
  func.func @transform_1(%arg0: i32, %arg1: i32) -> (i32, i32, i32, i32) {
    %c0_i32 = arith.constant 0 : i32
    %c0_i32_0 = arith.constant 0 : i32
    %c0_i32_1 = arith.constant 0 : i32
    %c0_i32_2 = arith.constant 0 : i32
    return %c0_i32, %c0_i32_0, %c0_i32_1, %arg1 : i32, i32, i32, i32
  }
  func.func @transform_2(%arg0: i32, %arg1: i32) -> (i32, i32) {
    %c0_i32 = arith.constant 0 : i32
    %c0_i32_0 = arith.constant 0 : i32
    return %c0_i32, %arg1 : i32, i32
  }
  func.func @transform_3(%arg0: i32, %arg1: i32) -> (i32, i32) {
    %c0_i32 = arith.constant 0 : i32
    %c0_i32_0 = arith.constant 0 : i32
    return %c0_i32, %arg1 : i32, i32
  }
  func.func @transform_4(%arg0: i32, %arg1: i32) -> (i32, i32) {
    %c0_i32 = arith.constant 0 : i32
    return %arg0, %arg1 : i32, i32
  }
}

</mosaic_0001>

<bundles_post_ra>
// kernel: tpu_custom_call.1
= control target key start
LH: loop header
LB: loop body
LE: loop exit
PB: predicated region body
PF: predicated region fallthrough
CT: control target
= control target key end

     0   :  { %vm88_vm0 = vcmask 261120   ;;  %vm282_vm1 = vcmask 1046528   ;;  %vm533_vm2 = vcmask 1045504   ;;  %s3757_s0 = inlined_call_operand.vmem [shape: bf16[3,120,32], index: 0, kind: input, shape index: {}]   ;;  %s3758_s1 = inlined_call_operand.vmem [shape: bf16[3,3,32,128], index: 1, kind: input, shape index: {}]   ;;  %s3759_s2 = inlined_call_operand.vmem [shape: f32[1,128], index: 2, kind: input, shape index: {}]   ;;  %s3760_s3 = inlined_call_operand.vmem [shape: f32[1,128], index: 3, kind: input, shape index: {}]   ;;  %s3761_s4 = inlined_call_operand.hbm [shape: bf16[120,128], index: 4, kind: output, shape index: {}]  }
   0x1   :  { %v3000_v0 = vld [vmem:[%s3758_s1 + $0x8] sm:$0xff]   ;;  %v3001_v1 = vld [vmem:[%s3758_s1] sm:$0xff]   ;;  %v3004_v4 = vld [vmem:[%s3758_s1 + $0x18] sm:$0xff]  }
   0x2   :  { %2992 = vmatprep.subr.bf16.mxu1 %v3000_v0  ;;  %2812 = vmatprep.subr.bf16.mxu0 %v3000_v0  ;;  %v3002_v2 = vld [vmem:[%s3757_s0 + $0x20] sm:$0xff]   ;;  %v3003_v3 = vld [vmem:[%s3757_s0 + $0x28] sm:$0xff]   ;;  %v3007_v7 = vld [vmem:[%s3757_s0 + $0x30] sm:$0xff]  }
   0x3   :  { %2994 = vmatpush3.bf16.msra.mxu1 %v3000_v0  ;;  %2813 = vmatpush3.bf16.msra.mxu0 %v3000_v0  ;;  %v3005_v5 = vld [vmem:[%s3757_s0] sm:$0xff]   ;;  %v3006_v6 = vld [vmem:[%s3757_s0 + $0x8] sm:$0xff]   ;;  %v3009_v8 = vld [vmem:[%s3758_s1 + $0x10] sm:$0xff]  }
   0x4   :  { %2993 = vmatprep.subr.bf16.mxu1 %v3001_v1  ;;  %2824 = vmatprep.mubr.msk.bf16.mxu1 %vm88_vm0, %v3002_v2  ;;  %v3010_v9 = vld [vmem:[%s3758_s1 + $0x28] sm:$0xff]   ;;  %v3011_v10 = vld [vmem:[%s3757_s0 + $0x10] sm:$0xff]   ;;  %v3008_v11 = vld [vmem:[%s3757_s0 + $0x38] ss:$0 sps:$4 sm:$0x33]  }
   0x5   :  { %2814 = vmatprep.subr.bf16.mxu0 %v3001_v1  ;;  %2816 = vmatprep.mubr.msk.bf16.mxu0 %vm88_vm0, %v3005_v5  ;;  %v3012_v12 = vld [vmem:[%s3757_s0 + $0x18] sm:$0xff]   ;;  %v3013_v13 = vld [vmem:[%s3757_s0] sm:$0xfe]   ;;  %v3014_v14 = vld [vmem:[%s3757_s0 + $0x8] sm:$0xff]  }
   0x6   :  { %v3015_v15 = vld [vmem:[%s3757_s0 + $0x10] sm:$0xff]   ;;  %v283_v16 = vrot.slane %v3013_v13, 1  ;;  %v284_v17 = vrot.slane %v3014_v14, 1  ;;  %v3016_v18 = vld [vmem:[%s3758_s1 + $0x38] sm:$0xff]   ;;  %v3017_v19 = vld [vmem:[%s3758_s1 + $0x20] sm:$0xff]  }
   0x7   :  { %2995 = vmatpush3.bf16.msra.mxu1 %v3001_v1  ;;  %2815 = vmatpush3.bf16.msra.mxu0 %v3001_v1  ;;  %v286_v20 = vrot.slane %v3015_v15, 1  ;;  %v3019_v21 = vld [vmem:[%s3757_s0 + $0x8] sm:$0xff]   ;;  %v3018_v23 = vld [vmem:[%s3757_s0] sm:$0xfc]   ;;  %v3020_v25 = vld [vmem:[%s3757_s0 + $0x10] sm:$0xff]  }
   0x8   :  { %2832 = vmatprep.subr.bf16.mxu1 %v3004_v4  ;;  %2852 = vmatprep.subr.bf16.mxu0 %v3010_v9  ;;  %v285_v22 = vsel %vm282_vm1, %v283_v16, %v284_v17  ;;  %v535_v24 = vrot.slane %v3019_v21, 2  ;;  %v534_v26 = vrot.slane %v3018_v23, 2  ;;  %v537_v27 = vrot.slane %v3020_v25, 2  ;;  %v3021_v28 = vld [vmem:[%s3757_s0 + $0x18] sm:$0xff]   ;;  %v3022_v29 = vld [vmem:[%s3757_s0 + $0x20] sm:$0xff]   ;;  %v3023_v34 = vld [vmem:[%s3758_s1 + $0x48] sm:$0xff]  }
   0x9   :  { %v287_v30 = vsel %vm282_vm1, %v284_v17, %v286_v20  ;;  %v288_v33 = vrot.slane %v3021_v28, 1  ;;  %v3024_v35 = vld [vmem:[%s3757_s0 + $0x18] sm:$0xff]   ;;  %v3025_v38 = vld [vmem:[%s3757_s0 + $0x20] sm:$0xff]   ;;  %v290_v39 = vrot.slane %v3022_v29, 1  ;;  %v3026_v40 = vld [vmem:[%s3757_s0 + $0x28] sm:$0xff]  }
   0xa   :  { %2825 = vmatmul.mubr.msk.bf16.vlgmr.msra.gmra.mxu1 %vm88_vm0, %v3003_v3  ;;  %2817 = vmatmul.mubr.msk.bf16.vlgmr.msra.gmra.mxu0 %vm88_vm0, %v3006_v6  ;;  %v536_v31 = vsel %vm533_vm2, %v534_v26, %v535_v24  ;;  %v538_v32 = vsel %vm533_vm2, %v535_v24, %v537_v27  ;;  %v539_v37 = vrot.slane %v3024_v35, 2  ;;  %v541_v42 = vrot.slane %v3025_v38, 2  ;;  %v3027_v43 = vld [vmem:[%s3757_s0 + $0x30] sm:$0xff]   ;;  %v3029_v46 = vld [vmem:[%s3757_s0 + $0x28] sm:$0xff]   ;;  %v3032_v53 = vld [vmem:[%s3758_s1 + $0x40] sm:$0xff]  }
   0xb   :  { %2833 = vmatpush3.bf16.msra.mxu1 %v3004_v4  ;;  %2828 = vmatprep.mubr.msk.bf16.mxu1 %vm88_vm0, %v3007_v7  ;;  %v289_v36 = vsel %vm282_vm1, %v286_v20, %v288_v33  ;;  %v292_v44 = vrot.slane %v3026_v40, 1  ;;  %v3028_v45 = vld [vmem:[%s3758_s1 + $0x30] sm:$0xff]   ;;  %v291_v48 = vsel %vm282_vm1, %v288_v33, %v290_v39  ;;  %v543_v50 = vrot.slane %v3029_v46, 2  ;;  %v3031_v51 = vld [vmem:[%s3757_s0 + $0x38] ss:$0 sps:$4 sm:$0x77]  }
   0xc   :  { %2834 = vmatprep.subr.bf16.mxu1 %v3009_v8  ;;  %2853 = vmatpush3.bf16.msra.mxu0 %v3010_v9  ;;  %v540_v41 = vsel %vm533_vm2, %v537_v27, %v539_v37  ;;  %v3030_v47 = vld [vmem:[%s3757_s0 + $0x30] sm:$0xff]   ;;  %v542_v49 = vsel %vm533_vm2, %v539_v37, %v541_v42  ;;  %v294_v54 = vrot.slane %v3027_v43, 1  ;;  %v3033_v56 = vld [vmem:[%s3757_s0 + $0x38] ss:$0 sps:$4 sm:$0xff]   ;;  %v296_v58 = vrot.slane %v3031_v51, 1  ;;  %v3038_v2 = vld [vmem:[%s3757_s0 + $0x44] sm:$0xff]  }
   0xd   :  { %2820 = vmatprep.mubr.msk.bf16.mxu0 %vm88_vm0, %v3011_v10  ;;  %2854 = vmatprep.subr.bf16.mxu0 %v3017_v19  ;;  %v293_v52 = vsel %vm282_vm1, %v290_v39, %v292_v44  ;;  %v544_v55 = vsel %vm533_vm2, %v541_v42, %v543_v50  ;;  %v545_v57 = vrot.slane %v3030_v47, 2  ;;  %v547_v59 = vrot.slane %v3033_v56, 2  ;;  %v3036_v60 = vld [vmem:[%s3758_s1 + $0x58] sm:$0xff]   ;;  %v3042_v3 = vld [vmem:[%s3758_s1 + $0x68] sm:$0xff]   ;;  %v3047_v16 = vld [vmem:[%s3758_s1 + $0x50] sm:$0xff]  }
   0xe   :  { %v295_v61 = vsel %vm282_vm1, %v292_v44, %v294_v54  ;;  %v3037_v63 = vld [vmem:[%s3757_s0 + $0x3c] sm:$0xfe]   ;;  %v297_v0 = vsel %vm282_vm1, %v294_v54, %v296_v58  ;;  %v1021_v5 = vrot.slane %v3038_v2, 1  ;;  %v3039_v7 = vld [vmem:[%s3757_s0 + $0x4c] sm:$0xff]   ;;  %v3043_v9 = vld [vmem:[%s3757_s0 + $0x54] sm:$0xff]  }
   0xf   :  { %2835 = vmatpush3.bf16.msra.mxu1 %v3009_v8  ;;  %v546_v62 = vsel %vm533_vm2, %v543_v50, %v545_v57  ;;  %v548_v1 = vsel %vm533_vm2, %v545_v57, %v547_v59  ;;  %v1020_v4 = vrot.slane %v3037_v63, 1  ;;  %v3034_v6 = vld [vmem:[%s3757_s0 + $0x3c] sm:$0xff]   ;;  %v1023_v10 = vrot.slane %v3039_v7, 1  ;;  %v3040_v13 = vld [vmem:[%s3757_s0 + $0x4c] sm:$0xff]   ;;  %v3048_v17 = vld [vmem:[%s3757_s0 + $0x64] sm:$0xff]  }
  0x10   :  { %2872 = vmatprep.subr.bf16.mxu1 %v3016_v18  ;;  %2855 = vmatpush3.bf16.msra.mxu0 %v3017_v19  ;;  %v3044_v14 = vld [vmem:[%s3757_s0 + $0x5c] sm:$0xff]   ;;  %v3041_v21 = vld [vmem:[%s3757_s0 + $0x54] sm:$0xff]   ;;  %v3062_v26 = vld [vmem:[%s3758_s1 + $0x88] sm:$0xff]  }
  0x11   :  { %2892 = vmatprep.subr.bf16.mxu0 %v3023_v34  ;;  %v1022_v8 = vsel %vm282_vm1, %v1020_v4, %v1021_v5  ;;  %v1024_v15 = vsel %vm282_vm1, %v1021_v5, %v1023_v10  ;;  %v3052_v19 = vld [vmem:[%s3758_s1 + $0x60] sm:$0xff]   ;;  %v1027_v20 = vrot.slane %v3044_v14, 1  ;;  %v3057_v23 = vld [vmem:[%s3758_s1 + $0x78] sm:$0xff]   ;;  %v3053_v25 = vld [vmem:[%s3757_s0 + $0x74] ss:$0 sps:$4 sm:$0x77]  }
  0x12   :  { %2829 = vmatmul.mubr.msk.bf16.gmra.mxu1 %vm88_vm0, %v3008_v11  ;;  %2821 = vmatmul.mubr.msk.bf16.gmra.mxu0 %vm88_vm0, %v3012_v12  ;;  %v3035_v11 = vld [vmem:[%s3757_s0 + $0x44] sm:$0xff]   ;;  %v1025_v12 = vrot.slane %v3043_v9, 1  ;;  %v3045_v24 = vld [vmem:[%s3757_s0 + $0x5c] sm:$0xff]   ;;  %v3049_v28 = vld [vmem:[%s3757_s0 + $0x6c] sm:$0xff]  }
  0x13   :  { %2836 = vmatprep.mubr.msk.bf16.mxu1 %vm88_vm0, %v285_v22  ;;  %2856 = vmatprep.mubr.msk.bf16.mxu0 %vm88_vm0, %v536_v31  ;;  %v1029_v22 = vrot.slane %v3048_v17, 1  ;;  %v1033_v31 = vrot.slane %v3053_v25, 1  ;;  %v3055_v37 = vld [vmem:[%s3757_s0 + $0x44] sm:$0xff]   ;;  %v3051_v40 = vld [vmem:[%s3757_s0 + $0x74] ss:$0 sps:$4 sm:$0x33]  }
  0x14   :  { %v1028_v27 = vsel %vm282_vm1, %v1025_v12, %v1027_v20  ;;  %v1271_v39 = vrot.slane %v3055_v37, 2  ;;  %v3058_v42 = vld [vmem:[%s3757_s0 + $0x78] sm:$0xff]   ;;  %v3059_v47 = vld [vmem:[%s3757_s0 + $0x80] sm:$0xff]   ;;  %v3063_v51 = vld [vmem:[%s3757_s0 + $0x88] sm:$0xff]  }
  0x15   :  { %v1030_v29 = vsel %vm282_vm1, %v1027_v20, %v1029_v22  ;;  %v3060_v44 = vld [vmem:[%s3757_s0 + $0x54] sm:$0xff]   ;;  %v3071_v54 = vld [vmem:[%s3758_s1 + $0x80] sm:$0xff]  }
  0x16   :  { %v1275_v46 = vrot.slane %v3060_v44, 2 }
  0x1a   :  { %2837 = vmatmul.mubr.msk.bf16.vlgmr.msra.gmra.mxu1 %vm88_vm0, %v287_v30  ;;  %2857 = vmatmul.mubr.msk.bf16.vlgmr.msra.gmra.mxu0 %vm88_vm0, %v538_v32  ;;  %v1031_v30 = vrot.slane %v3049_v28, 1  ;;  %v3046_v32 = vld [vmem:[%s3757_s0 + $0x64] sm:$0xff]  }
  0x1b   :  { %2873 = vmatpush3.bf16.msra.mxu1 %v3016_v18  ;;  %2840 = vmatprep.mubr.msk.bf16.mxu1 %vm88_vm0, %v289_v36  ;;  %v1026_v18 = vsel %vm282_vm1, %v1023_v10, %v1025_v12  ;;  %v3054_v36 = vld [vmem:[%s3757_s0 + $0x3c] sm:$0xfc]  }
  0x1c   :  { %2893 = vmatpush3.bf16.msra.mxu0 %v3023_v34  ;;  %2860 = vmatprep.mubr.msk.bf16.mxu0 %vm88_vm0, %v540_v41  ;;  %v1032_v33 = vsel %vm282_vm1, %v1029_v22, %v1031_v30  ;;  %v3050_v34 = vld [vmem:[%s3757_s0 + $0x6c] sm:$0xff]   ;;  %v1034_v35 = vsel %vm282_vm1, %v1031_v30, %v1033_v31  ;;  %v1270_v38 = vrot.slane %v3054_v36, 2 }
  0x1d   :  { %2874 = vmatprep.subr.bf16.mxu1 %v3028_v45  ;;  %2894 = vmatprep.subr.bf16.mxu0 %v3032_v53  ;;  %v3056_v41 = vld [vmem:[%s3757_s0 + $0x4c] sm:$0xff]  }
  0x1e   :  { %v1272_v43 = vsel %vm533_vm2, %v1270_v38, %v1271_v39 }
  0x1f   :  { %2875 = vmatpush3.bf16.msra.mxu1 %v3028_v45  ;;  %v1273_v45 = vrot.slane %v3056_v41, 2 }
  0x20   :  { %2895 = vmatpush3.bf16.msra.mxu0 %v3032_v53  ;;  %2912 = vmatprep.subr.bf16.mxu1 %v3036_v60  ;;  %v3067_v53 = vld [vmem:[%s3758_s1 + $0x70] sm:$0xff]  }
  0x21   :  { %2932 = vmatprep.subr.bf16.mxu0 %v3042_v3  ;;  %v1276_v50 = vsel %vm533_vm2, %v1273_v45, %v1275_v46 }
  0x22   :  { %2841 = vmatmul.mubr.msk.bf16.gmra.mxu1 %vm88_vm0, %v291_v48  ;;  %2861 = vmatmul.mubr.msk.bf16.gmra.mxu0 %vm88_vm0, %v542_v49  ;;  %v1274_v48 = vsel %vm533_vm2, %v1271_v39, %v1273_v45  ;;  %v3061_v49 = vld [vmem:[%s3757_s0 + $0x5c] sm:$0xff]  }
  0x23   :  { %2844 = vmatprep.mubr.msk.bf16.mxu1 %vm88_vm0, %v293_v52  ;;  %2864 = vmatprep.mubr.msk.bf16.mxu0 %vm88_vm0, %v544_v55  ;;  %v3065_v52 = vld [vmem:[%s3757_s0 + $0x64] sm:$0xff]  }
  0x2a   :  { %2845 = vmatmul.mubr.msk.bf16.gmra.mxu1 %vm88_vm0, %v295_v61  ;;  %2865 = vmatmul.mubr.msk.bf16.gmra.mxu0 %vm88_vm0, %v546_v62 }
  0x2b   :  { %2848 = vmatprep.mubr.msk.bf16.mxu1 %vm88_vm0, %v297_v0  ;;  %2868 = vmatprep.mubr.msk.bf16.mxu0 %vm88_vm0, %v548_v1 }
  0x32   :  { %2849 = vmatmul.mubr.msk.bf16.gmra.mxu1 %vm88_vm0, %v296_v58  ;;  %2869 = vmatmul.mubr.msk.bf16.gmra.mxu0 %vm88_vm0, %v547_v59 }
  0x33   :  { %2876 = vmatprep.mubr.msk.bf16.mxu1 %vm88_vm0, %v3034_v6  ;;  %2896 = vmatprep.mubr.msk.bf16.mxu0 %vm88_vm0, %v1022_v8 }
  0x3a   :  { %2877 = vmatmul.mubr.msk.bf16.vlgmr.msra.gmra.mxu1 %vm88_vm0, %v3035_v11  ;;  %2897 = vmatmul.mubr.msk.bf16.vlgmr.msra.gmra.mxu0 %vm88_vm0, %v1024_v15 }
  0x3b   :  { %2913 = vmatpush3.bf16.msra.mxu1 %v3036_v60  ;;  %2880 = vmatprep.mubr.msk.bf16.mxu1 %vm88_vm0, %v3040_v13 }
  0x3c   :  { %2933 = vmatpush3.bf16.msra.mxu0 %v3042_v3  ;;  %2900 = vmatprep.mubr.msk.bf16.mxu0 %vm88_vm0, %v1026_v18 }
  0x3d   :  { %2914 = vmatprep.subr.bf16.mxu1 %v3047_v16  ;;  %2934 = vmatprep.subr.bf16.mxu0 %v3052_v19 }
  0x3f   :  { %2915 = vmatpush3.bf16.msra.mxu1 %v3047_v16 }
  0x40   :  { %2935 = vmatpush3.bf16.msra.mxu0 %v3052_v19  ;;  %2952 = vmatprep.subr.bf16.mxu1 %v3057_v23 }
  0x41   :  { %2972 = vmatprep.subr.bf16.mxu0 %v3062_v26 }
  0x42   :  { %2881 = vmatmul.mubr.msk.bf16.gmra.mxu1 %vm88_vm0, %v3041_v21  ;;  %2901 = vmatmul.mubr.msk.bf16.gmra.mxu0 %vm88_vm0, %v1028_v27 }
  0x43   :  { %2884 = vmatprep.mubr.msk.bf16.mxu1 %vm88_vm0, %v3045_v24  ;;  %2904 = vmatprep.mubr.msk.bf16.mxu0 %vm88_vm0, %v1030_v29 }
  0x4a   :  { %2885 = vmatmul.mubr.msk.bf16.gmra.mxu1 %vm88_vm0, %v3046_v32  ;;  %2905 = vmatmul.mubr.msk.bf16.gmra.mxu0 %vm88_vm0, %v1032_v33 }
  0x4b   :  { %2888 = vmatprep.mubr.msk.bf16.mxu1 %vm88_vm0, %v3050_v34  ;;  %2908 = vmatprep.mubr.msk.bf16.mxu0 %vm88_vm0, %v1034_v35 }
  0x52   :  { %2889 = vmatmul.mubr.msk.bf16.gmra.mxu1 %vm88_vm0, %v3051_v40  ;;  %2909 = vmatmul.mubr.msk.bf16.gmra.mxu0 %vm88_vm0, %v1033_v31 }
  0x53   :  { %2916 = vmatprep.mubr.msk.bf16.mxu1 %vm88_vm0, %v1272_v43  ;;  %2936 = vmatprep.mubr.msk.bf16.mxu0 %vm88_vm0, %v3058_v42 }
  0x54   :  { %9 = vsyncpa [#allocation4], 0  ;;  %v1277_v55 = vrot.slane %v3061_v49, 2  ;;  %v1279_v56 = vrot.slane %v3065_v52, 2  ;;  %v3064_v57 = vld [vmem:[%s3757_s0 + $0x90] sm:$0xff]   ;;  %v3068_v60 = vld [vmem:[%s3757_s0 + $0x98] sm:$0xff]  }
  0x55   :  { %v3066_v59 = vld [vmem:[%s3757_s0 + $0x6c] sm:$0xff]   ;;  %v3070_v62 = vld [vmem:[%s3757_s0 + $0x74] ss:$0 sps:$4 sm:$0xff]   ;;  %v3069_v1 = vld [vmem:[%s3757_s0 + $0xa0] sm:$0xff]  }
  0x56   :  { %v1278_v58 = vsel %vm533_vm2, %v1275_v46, %v1277_v55  ;;  %v1280_v61 = vsel %vm533_vm2, %v1277_v55, %v1279_v56  ;;  %v1281_v63 = vrot.slane %v3066_v59, 2  ;;  %v1283_v0 = vrot.slane %v3070_v62, 2  ;;  %v3072_v3 = vld [vmem:[%s3757_s0 + $0xa8] sm:$0xff]   ;;  %v3075_v4 = vld [vmem:[%s3757_s0 + $0x80] sm:$0xff]   ;;  %v3074_v6 = vld [vmem:[%s3757_s0 + $0x78] sm:$0xfe]  }
  0x57   :  { %v3077_v7 = vld [vmem:[%s3757_s0 + $0x78] sm:$0xfc]   ;;  %v3078_v8 = vld [vmem:[%s3757_s0 + $0x80] sm:$0xff]   ;;  %v1756_v9 = vrot.slane %v3074_v6, 1  ;;  %v1757_v10 = vrot.slane %v3075_v4, 1  ;;  %v3076_v14 = vld [vmem:[%s3757_s0 + $0x88] sm:$0xff]  }
  0x58   :  { %v1282_v2 = vsel %vm533_vm2, %v1279_v56, %v1281_v63  ;;  %v1284_v5 = vsel %vm533_vm2, %v1281_v63, %v1283_v0  ;;  %v2006_v11 = vrot.slane %v3077_v7, 2  ;;  %v2007_v12 = vrot.slane %v3078_v8, 2  ;;  %v3073_v13 = vld [vmem:[%s3757_s0 + $0xb0] ss:$0 sps:$4 sm:$0x33]   ;;  %v3079_v15 = vld [vmem:[%s3757_s0 + $0x88] sm:$0xff]  }
  0x59   :  { %v1758_v16 = vsel %vm282_vm1, %v1756_v9, %v1757_v10  ;;  %v3080_v18 = vld [vmem:[%s3757_s0 + $0x90] sm:$0xff]   ;;  %v1759_v20 = vrot.slane %v3076_v14, 1  ;;  %v2009_v21 = vrot.slane %v3079_v15, 2  ;;  %v3083_v27 = vld [vmem:[%s3757_s0 + $0x98] sm:$0xff]   ;;  %v3084_v30 = vld [vmem:[%s3757_s0 + $0xa0] sm:$0xff]  }
  0x5a   :  { %2917 = vmatmul.mubr.msk.bf16.vlgmr.msra.gmra.mxu1 %vm88_vm0, %v1274_v48  ;;  %2937 = vmatmul.mubr.msk.bf16.vlgmr.msra.gmra.mxu0 %vm88_vm0, %v3059_v47  ;;  %v2008_v17 = vsel %vm533_vm2, %v2006_v11, %v2007_v12  ;;  %v3082_v19 = vld [vmem:[%s3757_s0 + $0x90] sm:$0xff]   ;;  %v1761_v22 = vrot.slane %v3080_v18, 1  ;;  %v3086_v31 = vld [vmem:[%s3757_s0 + $0xa0] sm:$0xff]   ;;  %v2013_v33 = vrot.slane %v3083_v27, 2  ;;  %v1765_v34 = vrot.slane %v3084_v30, 1  ;;  %v3085_v38 = vld [vmem:[%s3757_s0 + $0xa8] sm:$0xff]  }
  0x5b   :  { %2953 = vmatpush3.bf16.msra.mxu1 %v3057_v23  ;;  %2920 = vmatprep.mubr.msk.bf16.mxu1 %vm88_vm0, %v1276_v50  ;;  %v2011_v23 = vrot.slane %v3082_v19, 2  ;;  %v1760_v24 = vsel %vm282_vm1, %v1757_v10, %v1759_v20  ;;  %v2010_v25 = vsel %vm533_vm2, %v2007_v12, %v2009_v21  ;;  %v2015_v35 = vrot.slane %v3086_v31, 2  ;;  %v3087_v39 = vld [vmem:[%s3757_s0 + $0xa8] sm:$0xff]   ;;  %v3088_v42 = vld [vmem:[%s3757_s0 + $0xb0] ss:$0 sps:$4 sm:$0x77]  }
  0x5c   :  { %2973 = vmatpush3.bf16.msra.mxu0 %v3062_v26  ;;  %2940 = vmatprep.mubr.msk.bf16.mxu0 %vm88_vm0, %v3063_v51  ;;  %v3081_v26 = vld [vmem:[%s3757_s0 + $0x98] sm:$0xff]   ;;  %v1762_v28 = vsel %vm282_vm1, %v1759_v20, %v1761_v22  ;;  %v3089_v43 = vld [vmem:[%s3757_s0 + $0xb0] ss:$0 sps:$4 sm:$0xff]   ;;  %v1767_v44 = vrot.slane %v3085_v38, 1  ;;  %v2017_v45 = vrot.slane %v3087_v39, 2  ;;  %v1769_v46 = vrot.slane %v3088_v42, 1 }
  0x5d   :  { %2954 = vmatprep.subr.bf16.mxu1 %v3067_v53  ;;  %2974 = vmatprep.subr.bf16.mxu0 %v3071_v54  ;;  %v2012_v29 = vsel %vm533_vm2, %v2009_v21, %v2011_v23  ;;  %v1763_v32 = vrot.slane %v3081_v26, 1  ;;  %v2014_v37 = vsel %vm533_vm2, %v2011_v23, %v2013_v33  ;;  %v2016_v41 = vsel %vm533_vm2, %v2013_v33, %v2015_v35 }
  0x5e   :  { %v2019_v47 = vrot.slane %v3089_v43, 2  ;;  %v1768_v48 = vsel %vm282_vm1, %v1765_v34, %v1767_v44  ;;  %v2018_v49 = vsel %vm533_vm2, %v2015_v35, %v2017_v45  ;;  %v1770_v50 = vsel %vm282_vm1, %v1767_v44, %v1769_v46 }
  0x5f   :  { %2955 = vmatpush3.bf16.msra.mxu1 %v3067_v53  ;;  %v1764_v36 = vsel %vm282_vm1, %v1761_v22, %v1763_v32  ;;  %v1766_v40 = vsel %vm282_vm1, %v1763_v32, %v1765_v34 }
  0x60   :  { %2975 = vmatpush3.bf16.msra.mxu0 %v3071_v54  ;;  %v2020_v51 = vsel %vm533_vm2, %v2017_v45, %v2019_v47 }
  0x62   :  { %2921 = vmatmul.mubr.msk.bf16.gmra.mxu1 %vm88_vm0, %v1278_v58  ;;  %2941 = vmatmul.mubr.msk.bf16.gmra.mxu0 %vm88_vm0, %v3064_v57 }
  0x63   :  { %2924 = vmatprep.mubr.msk.bf16.mxu1 %vm88_vm0, %v1280_v61  ;;  %2944 = vmatprep.mubr.msk.bf16.mxu0 %vm88_vm0, %v3068_v60 }
  0x6a   :  { %2925 = vmatmul.mubr.msk.bf16.gmra.mxu1 %vm88_vm0, %v1282_v2  ;;  %2945 = vmatmul.mubr.msk.bf16.gmra.mxu0 %vm88_vm0, %v3069_v1 }
  0x6b   :  { %2928 = vmatprep.mubr.msk.bf16.mxu1 %vm88_vm0, %v1284_v5  ;;  %2948 = vmatprep.mubr.msk.bf16.mxu0 %vm88_vm0, %v3072_v3 }
  0x72   :  { %2929 = vmatmul.mubr.msk.bf16.gmra.mxu1 %vm88_vm0, %v1283_v0  ;;  %2949 = vmatmul.mubr.msk.bf16.gmra.mxu0 %vm88_vm0, %v3073_v13 }
  0x73   :  { %2956 = vmatprep.mubr.msk.bf16.mxu1 %vm88_vm0, %v1758_v16  ;;  %2976 = vmatprep.mubr.msk.bf16.mxu0 %vm88_vm0, %v2008_v17 }
  0x7a   :  { %2957 = vmatmul.mubr.msk.bf16.vlgmr.msra.gmra.mxu1 %vm88_vm0, %v1760_v24  ;;  %2977 = vmatmul.mubr.msk.bf16.vlgmr.msra.gmra.mxu0 %vm88_vm0, %v2010_v25 }
  0x7b   :  { %2960 = vmatprep.mubr.msk.bf16.mxu1 %vm88_vm0, %v1762_v28  ;;  %2980 = vmatprep.mubr.msk.bf16.mxu0 %vm88_vm0, %v2012_v29 }
  0x82   :  { %2961 = vmatmul.mubr.msk.bf16.gmra.mxu1 %vm88_vm0, %v1764_v36  ;;  %2981 = vmatmul.mubr.msk.bf16.gmra.mxu0 %vm88_vm0, %v2014_v37 }
  0x83   :  { %2964 = vmatprep.mubr.msk.bf16.mxu1 %vm88_vm0, %v1766_v40  ;;  %2984 = vmatprep.mubr.msk.bf16.mxu0 %vm88_vm0, %v2016_v41 }
  0x8a   :  { %2965 = vmatmul.mubr.msk.bf16.gmra.mxu1 %vm88_vm0, %v1768_v48  ;;  %2985 = vmatmul.mubr.msk.bf16.gmra.mxu0 %vm88_vm0, %v2018_v49  ;;  %v3112_v49 = vmov 0  }
  0x8b   :  { %2968 = vmatprep.mubr.msk.bf16.mxu1 %vm88_vm0, %v1770_v50  ;;  %2988 = vmatprep.mubr.msk.bf16.mxu0 %vm88_vm0, %v2020_v51  ;;  %2348 = vst [vmem:[#allocation3 + $0x38] sm:$0xc] %v3112_v49 }
  0x92   :  { %2969 = vmatmul.mubr.msk.bf16.gmra.mxu1 %vm88_vm0, %v1769_v46  ;;  %2989 = vmatmul.mubr.msk.bf16.gmra.mxu0 %vm88_vm0, %v2019_v47 }
  0xca   :  { %v2826_v52 = vpop.f32.mrf.mxu1  ;;  %v2818_v53 = vpop.f32.mrf.mxu0 }
  0xcc   :  { %v179_v54 = vpop.f32.mrf.mxu1  ;;  %v147_v55 = vpop.f32.mrf.mxu0 }
  0xce   :  { %v2827_v56 = vpop.f32.mrf.mxu1  ;;  %v2819_v57 = vpop.f32.mrf.mxu0 }
  0xd0   :  { %v182_v58 = vpop.f32.mrf.mxu1  ;;  %v150_v59 = vpop.f32.mrf.mxu0 }
  0xd2   :  { %v2830_v60 = vpop.f32.mrf.mxu1  ;;  %v2822_v61 = vpop.f32.mrf.mxu0 }
  0xd3   :  { %223 = vst [vmem:[#allocation2 + $0x28] sm:$0xf] %v2830_v60 }
  0xd4   :  { %v3525_v62 = vpop.f32.mrf.mxu1  ;;  %v163_v63 = vpop.f32.mrf.mxu0 }
  0xd6   :  { %v2831_v0 = vpop.f32.mrf.mxu1  ;;  %v2823_v1 = vpop.f32.mrf.mxu0 }
  0xd8   :  { %v3527_v2 = vpop.f32.mrf.mxu1  ;;  %v166_v3 = vpop.f32.mrf.mxu0 }
  0xda   :  { %v2838_v4 = vpop.f32.mrf.mxu1  ;;  %v2858_v5 = vpop.f32.mrf.mxu0 }
  0xdb   :  { %v447_v6 = vadd.f32 %v2838_v4, %v2818_v53  ;;  %v444_v53 = vld [vmem:[#allocation2 + $0x28] sm:$0xf] }
  0xdc   :  { %v368_v7 = vpop.f32.mrf.mxu1  ;;  %v619_v8 = vpop.f32.mrf.mxu0 }
  0xdd   :  { %v445_v9 = vadd.f32 %v368_v7, %v147_v55  ;;  %v3529_v10 = vadd.f32 %v2858_v5, %v447_v6 }
  0xde   :  { %v2839_v11 = vpop.f32.mrf.mxu1  ;;  %v2859_v12 = vpop.f32.mrf.mxu0 }
  0xdf   :  { %v448_v13 = vadd.f32 %v2839_v11, %v2819_v57  ;;  %v3531_v14 = vadd.f32 %v619_v8, %v445_v9 }
  0xe0   :  { %v371_v15 = vpop.f32.mrf.mxu1  ;;  %v622_v16 = vpop.f32.mrf.mxu0 }
  0xe1   :  { %v446_v17 = vadd.f32 %v371_v15, %v150_v59  ;;  %v3533_v18 = vadd.f32 %v2859_v12, %v448_v13 }
  0xe2   :  { %v2842_v19 = vpop.f32.mrf.mxu1  ;;  %v2862_v20 = vpop.f32.mrf.mxu0 }
  0xe3   :  { %v451_v21 = vadd.f32 %v2842_v19, %v2822_v61  ;;  %v3535_v22 = vadd.f32 %v622_v16, %v446_v17 }
  0xe4   :  { %v384_v23 = vpop.f32.mrf.mxu1  ;;  %v635_v24 = vpop.f32.mrf.mxu0 }
  0xe5   :  { %v449_v25 = vadd.f32 %v384_v23, %v163_v63  ;;  %v3537_v26 = vadd.f32 %v2862_v20, %v451_v21 }
  0xe6   :  { %v2843_v27 = vpop.f32.mrf.mxu1  ;;  %v2863_v28 = vpop.f32.mrf.mxu0 }
  0xe7   :  { %v452_v29 = vadd.f32 %v2843_v27, %v2823_v1  ;;  %v3539_v30 = vadd.f32 %v635_v24, %v449_v25 }
  0xe8   :  { %v387_v31 = vpop.f32.mrf.mxu1  ;;  %v638_v32 = vpop.f32.mrf.mxu0 }
  0xe9   :  { %v450_v33 = vadd.f32 %v387_v31, %v166_v3  ;;  %v3541_v34 = vadd.f32 %v2863_v28, %v452_v29 }
  0xea   :  { %v2846_v35 = vpop.f32.mrf.mxu1  ;;  %v2866_v36 = vpop.f32.mrf.mxu0 }
  0xeb   :  { %v455_v37 = vadd.f32 %v2846_v35, %v2826_v52  ;;  %v3543_v38 = vadd.f32 %v638_v32, %v450_v33 }
  0xec   :  { %v400_v39 = vpop.f32.mrf.mxu1  ;;  %v651_v40 = vpop.f32.mrf.mxu0 }
  0xed   :  { %v453_v41 = vadd.f32 %v400_v39, %v179_v54  ;;  %v3545_v42 = vadd.f32 %v2866_v36, %v455_v37 }
  0xee   :  { %v2847_v43 = vpop.f32.mrf.mxu1  ;;  %v2867_v44 = vpop.f32.mrf.mxu0 }
  0xef   :  { %v456_v45 = vadd.f32 %v2847_v43, %v2827_v56  ;;  %v3547_v46 = vadd.f32 %v651_v40, %v453_v41 }
  0xf0   :  { %v403_v47 = vpop.f32.mrf.mxu1  ;;  %v654_v48 = vpop.f32.mrf.mxu0 }
  0xf1   :  { %v454_v50 = vadd.f32 %v403_v47, %v182_v58  ;;  %v3549_v51 = vadd.f32 %v2867_v44, %v456_v45 }
  0xf2   :  { %v2850_v52 = vpop.f32.mrf.mxu1  ;;  %v2870_v55 = vpop.f32.mrf.mxu0 }
  0xf3   :  { %v459_v57 = vadd.f32 %v2850_v52, %v444_v53  ;;  %v3551_v59 = vadd.f32 %v654_v48, %v454_v50 }
  0xf4   :  { %v416_v54 = vpop.f32.mrf.mxu1  ;;  %v667_v60 = vpop.f32.mrf.mxu0 }
  0xf5   :  { %474 = vst [vmem:[#allocation2 + $0x28] sm:$0xf] %v459_v57  ;;  %v457_v56 = vadd.f32 %v416_v54, %v3525_v62 }
  0xf6   :  { %v2851_v61 = vpop.f32.mrf.mxu1  ;;  %v2871_v63 = vpop.f32.mrf.mxu0 }
  0xf7   :  { %v3554_v0 = vadd.f32 %v667_v60, %v457_v56 }
  0xf8   :  { %v419_v1 = vpop.f32.mrf.mxu1  ;;  %v670_v3 = vpop.f32.mrf.mxu0 }
  0xf9   :  { %v458_v58 = vadd.f32 %v419_v1, %v3527_v2 }
  0xfa   :  { %v3557_v4 = vpop.f32.mrf.mxu1  ;;  %v3559_v5 = vpop.f32.mrf.mxu0 }
  0xfb   :  { %v3561_v6 = vadd.f32 %v670_v3, %v458_v58 }
  0xfc   :  { %v695_v7 = vld [vmem:[#allocation2 + $0x28] sm:$0xf]  ;;  %v3563_v8 = vpop.f32.mrf.mxu1  ;;  %v3565_v9 = vpop.f32.mrf.mxu0 }
  0xfd   :  { %3762 = vst [vmem:[#allocation6_spill] sm:$0xff] %v3561_v6  ;;  %v710_v62 = vadd.f32 %v2870_v55, %v695_v7 }
  0xfe   :  { %v2879_v11 = vpop.f32.mrf.mxu1  ;;  %v3567_v12 = vpop.f32.mrf.mxu0 }
  0xff   :  { %725 = vst [vmem:[#allocation2 + $0x28] sm:$0xf] %v710_v62 }
 0x100   :  { %v3569_v13 = vpop.f32.mrf.mxu1  ;;  %v3571_v15 = vpop.f32.mrf.mxu0 }
 0x102   :  { %v3573_v2 = vpop.f32.mrf.mxu1  ;;  %v3575_v16 = vpop.f32.mrf.mxu0 }
 0x104   :  { %v3577_v17 = vpop.f32.mrf.mxu1  ;;  %v3579_v19 = vpop.f32.mrf.mxu0 }
 0x106   :  { %v3581_v20 = vpop.f32.mrf.mxu1  ;;  %v3583_v21 = vpop.f32.mrf.mxu0  ;;  %v931_v37 = vld [vmem:[#allocation2 + $0x28] sm:$0xf] }
 0x108   :  { %v3585_v23 = vpop.f32.mrf.mxu1  ;;  %v3587_v24 = vpop.f32.mrf.mxu0 }
 0x10a   :  { %v3589_v25 = vpop.f32.mrf.mxu1  ;;  %v3591_v27 = vpop.f32.mrf.mxu0 }
 0x10c   :  { %v3593_v28 = vpop.f32.mrf.mxu1  ;;  %v3595_v29 = vpop.f32.mrf.mxu0 }
 0x10e   :  { %v3597_v31 = vpop.f32.mrf.mxu1  ;;  %v3599_v32 = vpop.f32.mrf.mxu0 }
 0x110   :  { %v3601_v33 = vpop.f32.mrf.mxu1  ;;  %v3603_v35 = vpop.f32.mrf.mxu0 }
 0x112   :  { %v2890_v36 = vpop.f32.mrf.mxu1  ;;  %v2910_v39 = vpop.f32.mrf.mxu0 }
 0x113   :  { %v946_v40 = vadd.f32 %v2890_v36, %v931_v37 }
 0x114   :  { %v3605_v41 = vpop.f32.mrf.mxu1  ;;  %v3607_v43 = vpop.f32.mrf.mxu0 }
 0x115   :  { %3763 = vst [vmem:[#allocation7_spill] sm:$0xff] %v3607_v43  ;;  %961 = vst [vmem:[#allocation2 + $0x28] sm:$0xf] %v946_v40  ;;  %v932_v43 = vadd.f32 %v3563_v8, %v3531_v14 }
 0x116   :  { %v2891_v44 = vpop.f32.mrf.mxu1  ;;  %v2911_v45 = vpop.f32.mrf.mxu0 }
 0x118   :  { %v3609_v47 = vpop.f32.mrf.mxu1  ;;  %v3611_v48 = vpop.f32.mrf.mxu0 }
 0x119   :  { %3764 = vst [vmem:[#allocation8_spill] sm:$0xff] %v3609_v47  ;;  %3765 = vst [vmem:[#allocation9_spill] sm:$0xff] %v3611_v48  ;;  %v934_v48 = vadd.f32 %v3557_v4, %v3529_v10  ;;  %v1182_v4 = vadd.f32 %v3565_v9, %v932_v43 }
 0x11a   :  { %v2918_v49 = vpop.f32.mrf.mxu1  ;;  %v2938_v50 = vpop.f32.mrf.mxu0 }
 0x11c   :  { %v1181_v52 = vld [vmem:[#allocation2 + $0x28] sm:$0xf]  ;;  %v1355_v53 = vpop.f32.mrf.mxu1  ;;  %v1591_v55 = vpop.f32.mrf.mxu0 }
 0x11d   :  { %v1196_v57 = vadd.f32 %v2910_v39, %v1181_v52 }
 0x11e   :  { %v2919_v54 = vpop.f32.mrf.mxu1  ;;  %v2939_v60 = vpop.f32.mrf.mxu0 }
 0x11f   :  { %1211 = vst [vmem:[#allocation2 + $0x28] sm:$0xf] %v1196_v57 }
 0x120   :  { %v1358_v56 = vpop.f32.mrf.mxu1  ;;  %v3613_v61 = vpop.f32.mrf.mxu0 }
 0x122   :  { %v2922_v63 = vpop.f32.mrf.mxu1  ;;  %v3615_v1 = vpop.f32.mrf.mxu0 }
 0x124   :  { %v3617_v3 = vpop.f32.mrf.mxu1  ;;  %v3619_v58 = vpop.f32.mrf.mxu0 }
 0x126   :  { %v3621_v7 = vpop.f32.mrf.mxu1  ;;  %v3623_v62 = vpop.f32.mrf.mxu0 }
 0x127   :  { %3766 = vst [vmem:[#allocation10_spill] sm:$0xff] %v3623_v62 }
 0x128   :  { %v3625_v36 = vpop.f32.mrf.mxu1  ;;  %v3627_v37 = vpop.f32.mrf.mxu0 }
 0x129   :  { %3767 = vst [vmem:[#allocation11_spill] sm:$0xff] %v3627_v37 }
 0x12a   :  { %v3629_v39 = vpop.f32.mrf.mxu1  ;;  %v3631_v40 = vpop.f32.mrf.mxu0 }
 0x12b   :  { %3768 = vst [vmem:[#allocation12_spill] sm:$0xff] %v3629_v39  ;;  %3769 = vst [vmem:[#allocation13_spill] sm:$0xff] %v3631_v40  ;;  %v935_v40 = vadd.f32 %v2879_v11, %v3533_v18  ;;  %v938_v11 = vadd.f32 %v3573_v2, %v3537_v26 }
 0x12c   :  { %v3633_v44 = vpop.f32.mrf.mxu1  ;;  %v3635_v45 = vpop.f32.mrf.mxu0 }
 0x12d   :  { %3770 = vst [vmem:[#allocation14_spill] sm:$0xff] %v3633_v44  ;;  %3771 = vst [vmem:[#allocation15_spill] sm:$0xff] %v3635_v45  ;;  %v1431_v44 = vld [vmem:[#allocation2 + $0x28] sm:$0xf]  ;;  %v1184_v45 = vadd.f32 %v3559_v5, %v934_v48  ;;  %v1185_v14 = vadd.f32 %v3567_v12, %v935_v40  ;;  %v1432_v5 = vadd.f32 %v1355_v53, %v1182_v4 }
 0x12e   :  { %v3637_v52 = vpop.f32.mrf.mxu1  ;;  %v3639_v57 = vpop.f32.mrf.mxu0  ;;  %v936_v48 = vadd.f32 %v3577_v17, %v3539_v30  ;;  %v939_v12 = vadd.f32 %v3581_v20, %v3541_v34  ;;  %v1188_v26 = vadd.f32 %v3575_v16, %v938_v11  ;;  %v937_v30 = vadd.f32 %v3585_v23, %v3543_v38  ;;  %v3679_v34 = vld [vmem:[%s3759_s2] ss:$0 sm:$0xff] }
 0x12f   :  { %3772 = vst [vmem:[#allocation16_spill] sm:$0xff] %v3637_v52  ;;  %3773 = vst [vmem:[#allocation17_spill] sm:$0xff] %v3639_v57  ;;  %v933_v57 = vadd.f32 %v3569_v13, %v3535_v22  ;;  %v1435_v13 = vadd.f32 %v2919_v54, %v1185_v14  ;;  %v1668_v2 = vadd.f32 %v1591_v55, %v1432_v5 }
 0x130   :  { %v3643_v47 = vpop.f32.mrf.mxu1  ;;  %v3645_v6 = vpop.f32.mrf.mxu0  ;;  %v942_v17 = vadd.f32 %v3589_v25, %v3545_v42  ;;  %v1438_v16 = vadd.f32 %v2922_v63, %v1188_v26  ;;  %v1189_v38 = vadd.f32 %v3583_v21, %v939_v12  ;;  %v943_v42 = vadd.f32 %v3597_v31, %v3549_v51  ;;  %v3696_v51 = vld [vmem:[%s3760_s3] ss:$0 sm:$0xff]  ;;  %s3113_s3 = smov [#allocation3]  }
 0x131   :  { %3774 = vst [vmem:[#allocation18_spill] sm:$0xff] %v3645_v6  ;;  %v1434_v6 = vadd.f32 %v2918_v49, %v1184_v45  ;;  %v1183_v22 = vadd.f32 %v3571_v15, %v933_v57  ;;  %v1186_v15 = vadd.f32 %v3579_v19, %v936_v48  ;;  %v1671_v54 = vadd.f32 %v2939_v60, %v1435_v13  ;;  %v3775_v13 = vld [vmem:[#allocation10_spill] sm:$0xff]  ;;  %s2354_s13 = sshll.u32 %s3113_s3, 4  ;;  %s2355_s13 = int_to_ptr.vmem [resolvable:$true] %s2354_s13 }
 0x132   :  { %v2930_v37 = vpop.f32.mrf.mxu1  ;;  %v2950_v39 = vpop.f32.mrf.mxu0  ;;  %v940_v19 = vadd.f32 %v3593_v28, %v3547_v46  ;;  %v1187_v4 = vadd.f32 %v3587_v24, %v937_v30  ;;  %v941_v21 = vadd.f32 %v3601_v33, %v3551_v59  ;;  %v1439_v46 = vadd.f32 %v3621_v7, %v1189_v38  ;;  %v3778_v30 = vld [vmem:[#allocation11_spill] sm:$0xff]  ;;  %s3090_s14 = scalar_lea.vmem %s2355_s13, 960  ;;  %p3095_p1 = scmp.lt.s32.totalorder %s2355_s13, %s2355_s13 }
 0x133   :  { %v1446_v52 = vadd.f32 %v2930_v37, %v1431_v44  ;;  %v1670_v9 = vadd.f32 %v2938_v50, %v1434_v6  ;;  %v1433_v43 = vadd.f32 %v1358_v56, %v1183_v22  ;;  %p3091_p0 = scmp.ne.s32.totalorder %s2355_s13, %s3090_s14  ;;  %p3096_p2 = scmp.lt.s32.totalorder %s3090_s14, %s3090_s14 }
 0x134   :  { %v3653_v62 = vpop.f32.mrf.mxu1  ;;  %v3655_v10 = vpop.f32.mrf.mxu0  ;;  %v1190_v24 = vadd.f32 %v3595_v29, %v940_v19  ;;  %v1437_v59 = vadd.f32 %v3625_v36, %v1187_v4  ;;  %v1191_v29 = vadd.f32 %v3603_v35, %v941_v21 }
 0x135   :  { %1461 = vst [vmem:[#allocation2 + $0x28] sm:$0xf] %v1446_v52  ;;  %v1669_v23 = vadd.f32 %v3613_v61, %v1433_v43  ;;  %v1436_v52 = vadd.f32 %v3617_v3, %v1186_v15  ;;  %v1192_v61 = vadd.f32 %v3591_v27, %v942_v17  ;;  %v1674_v3 = vadd.f32 %v3615_v1, %v1438_v16  ;;  %v3776_v43 = vld [vmem:[#allocation12_spill] sm:$0xff]  ;;  %v3779_v16 = vld [vmem:[#allocation7_spill] sm:$0xff]  ;;  %p3097_p3 = por %p3096_p2, %p3095_p1 }
 0x136   :  { %v2931_v18 = vpop.f32.mrf.mxu1  ;;  %v2951_v8 = vpop.f32.mrf.mxu0  ;;  %v944_v1 = vadd.f32 %v3605_v41, %v3554_v0  ;;  %v1673_v15 = vadd.f32 %v3778_v30, %v1437_v59 }
 0x137   :  { %v1193_v8 = vadd.f32 %v3599_v32, %v943_v42  ;;  %v1672_v5 = vadd.f32 %v3619_v58, %v1436_v52  ;;  %v1675_v32 = vadd.f32 %v3775_v13, %v1439_v46  ;;  %p3098_p4 = pnand %p3097_p3, %p3091_p0 }
 0x138   :  { %v3664_v37 = vpop.f32.mrf.mxu1  ;;  %v3666_v44 = vpop.f32.mrf.mxu0 }
 0x13a   :  { %v2958_v49 = vpop.f32.mrf.mxu1  ;;  %v2978_v40 = vpop.f32.mrf.mxu0 }
 0x13b   :  { %v1920_v53 = vadd.f32 %v2958_v49, %v1670_v9  ;;  %v1442_v49 = vadd.f32 %v3776_v43, %v1192_v61  ;;  %v3782_v61 = vld [vmem:[#allocation6_spill] sm:$0xff] }
 0x13c   :  { %v1667_v6 = vld [vmem:[#allocation2 + $0x28] sm:$0xf]  ;;  %v1841_v50 = vpop.f32.mrf.mxu1  ;;  %v2091_v20 = vpop.f32.mrf.mxu0 }
 0x13d   :  { %v1682_v55 = vadd.f32 %v2950_v39, %v1667_v6  ;;  %v1918_v56 = vadd.f32 %v1841_v50, %v1668_v2  ;;  %v2170_v45 = vadd.f32 %v2978_v40, %v1920_v53  ;;  %v3777_v2 = vld [vmem:[#allocation14_spill] sm:$0xff] }
 0x13e   :  { %v2959_v25 = vpop.f32.mrf.mxu1  ;;  %v2979_v60 = vpop.f32.mrf.mxu0  ;;  %v1440_v53 = vadd.f32 %v3777_v2, %v1190_v24 }
 0x13f   :  { %1697 = vst [vmem:[#allocation2 + $0x28] sm:$0xf] %v1682_v55  ;;  %v1921_v57 = vadd.f32 %v2959_v25, %v1671_v54  ;;  %v2222_v63 = vmul.f32 %v3679_v34, %v2170_v45  ;;  %v2168_v39 = vadd.f32 %v2091_v20, %v1918_v56  ;;  %v1194_v55 = vadd.f32 %v3779_v16, %v944_v1  ;;  %v3780_v56 = vld [vmem:[#allocation16_spill] sm:$0xff]  ;;  %v3781_v25 = vld [vmem:[#allocation13_spill] sm:$0xff] }
 0x140   :  { %v1844_v28 = vpop.f32.mrf.mxu1  ;;  %v2094_v31 = vpop.f32.mrf.mxu0  ;;  %v1443_v45 = vadd.f32 %v3780_v56, %v1193_v8 }
 0x141   :  { %v1919_v14 = vadd.f32 %v1844_v28, %v1669_v23  ;;  %v2171_v18 = vadd.f32 %v2979_v60, %v1921_v57  ;;  %v2220_v33 = vmul.f32 %v3679_v34, %v2168_v39  ;;  %v2244_v48 = vadd.f32 %v3696_v51, %v2222_v63 }
 0x142   :  { %v2962_v7 = vpop.f32.mrf.mxu1  ;;  %v2982_v11 = vpop.f32.mrf.mxu0  ;;  %v1678_v60 = vadd.f32 %v3781_v25, %v1442_v49  ;;  %v1441_v39 = vadd.f32 %v3643_v47, %v1191_v29  ;;  %v1444_v49 = vadd.f32 %v3653_v62, %v1194_v55 }
 0x143   :  { %v1924_v22 = vadd.f32 %v2962_v7, %v1674_v3  ;;  %v2223_v27 = vmul.f32 %v3679_v34, %v2171_v18  ;;  %v2169_v36 = vadd.f32 %v2094_v31, %v1919_v14  ;;  %v2242_v17 = vadd.f32 %v3696_v51, %v2220_v33  ;;  %v3783_v3 = vld [vmem:[#allocation8_spill] sm:$0xff]  ;;  %v3784_v18 = vld [vmem:[#allocation15_spill] sm:$0xff]  ;;  %v3785_v33 = vld [vmem:[#allocation17_spill] sm:$0xff] }
 0x144   :  { %v1857_v9 = vpop.f32.mrf.mxu1  ;;  %v2107_v12 = vpop.f32.mrf.mxu0  ;;  %v2259_v54 = vmax.f32 %v2244_v48, 0.0  ;;  %v945_v14 = vadd.f32 %v3783_v3, %v3782_v61  ;;  %v1676_v24 = vadd.f32 %v3784_v18, %v1440_v53  ;;  %v1679_v7 = vadd.f32 %v3785_v33, %v1443_v45 }
 0x145   :  { %v2245_v40 = vadd.f32 %v3696_v51, %v2223_v27  ;;  %v1922_v58 = vadd.f32 %v1857_v9, %v1672_v5  ;;  %v2174_v26 = vadd.f32 %v2982_v11, %v1924_v22  ;;  %v2221_v0 = vmul.f32 %v3679_v34, %v2169_v36 }
 0x146   :  { %v2963_v35 = vpop.f32.mrf.mxu1  ;;  %v2983_v41 = vpop.f32.mrf.mxu0  ;;  %v2257_v4 = vmax.f32 %v2242_v17, 0.0  ;;  %v1917_v62 = vld [vmem:[#allocation2 + $0x28] sm:$0xf] }
 0x147   :  { %v2260_v6 = vmax.f32 %v2245_v40, 0.0  ;;  %v1925_v50 = vadd.f32 %v2963_v35, %v1675_v32  ;;  %v2172_v20 = vadd.f32 %v2107_v12, %v1922_v58  ;;  %v2243_v38 = vadd.f32 %v3696_v51, %v2221_v0  ;;  %v3786_v32 = vld [vmem:[#allocation18_spill] sm:$0xff]  ;;  %v3787_v0 = vld [vmem:[#allocation9_spill] sm:$0xff] }
 0x148   :  { %v2226_v19 = vmul.f32 %v3679_v34, %v2174_v26  ;;  %v1860_v42 = vpop.f32.mrf.mxu1  ;;  %v2110_v23 = vpop.f32.mrf.mxu0  ;;  %v1677_v9 = vadd.f32 %v3786_v32, %v1441_v39  ;;  %v1195_v35 = vadd.f32 %v3787_v0, %v945_v14 }
 0x149   :  { %v2689_v52 = vpack.c.bf16 %v2260_v6, %v2259_v54  ;;  %v1923_v57 = vadd.f32 %v1860_v42, %v1673_v15  ;;  %v2224_v63 = vmul.f32 %v3679_v34, %v2172_v20  ;;  %v2258_v21 = vmax.f32 %v2243_v38, 0.0 }
 0x14a   :  { %v2966_v46 = vpop.f32.mrf.mxu1  ;;  %v2175_v28 = vadd.f32 %v2983_v41, %v1925_v50  ;;  %v2986_v31 = vpop.f32.mrf.mxu0  ;;  %v2248_v5 = vadd.f32 %v3696_v51, %v2226_v19  ;;  %v1445_v45 = vadd.f32 %v3664_v37, %v1195_v35  ;;  %v1680_v38 = vadd.f32 %v3655_v10, %v1444_v49 }
 0x14b   :  { %2716 = vst [vmem:[#allocation3 + $0x8] sm:$0xff] %v2689_v52   ;;  %v1928_v8 = vadd.f32 %v2966_v46, %v1678_v60  ;;  %v2173_v59 = vadd.f32 %v2110_v23, %v1923_v57  ;;  %v2684_v11 = vpack.c.bf16 %v2258_v21, %v2257_v4  ;;  %v2246_v27 = vadd.f32 %v3696_v51, %v2224_v63 }
 0x14c   :  { %v2227_v47 = vmul.f32 %v3679_v34, %v2175_v28  ;;  %v1873_v48 = vpop.f32.mrf.mxu1  ;;  %v2123_v22 = vpop.f32.mrf.mxu0  ;;  %v2263_v2 = vmax.f32 %v2248_v5, 0.0  ;;  %v1681_v46 = vadd.f32 %v3666_v44, %v1445_v45 }
 0x14d   :  { %v1926_v1 = vadd.f32 %v1873_v48, %v1676_v24  ;;  %v2225_v29 = vmul.f32 %v3679_v34, %v2173_v59  ;;  %v2178_v13 = vadd.f32 %v2986_v31, %v1928_v8  ;;  %2685 = vst [vmem:[#allocation3] sm:$0xff] %v2684_v11   ;;  %v2261_v41 = vmax.f32 %v2246_v27, 0.0 }
 0x14e   :  { %v2249_v36 = vadd.f32 %v3696_v51, %v2227_v47  ;;  %v2967_v12 = vpop.f32.mrf.mxu1  ;;  %v2987_v43 = vpop.f32.mrf.mxu0 }
 0x14f   :  { %v2247_v40 = vadd.f32 %v3696_v51, %v2225_v29  ;;  %v1929_v58 = vadd.f32 %v2967_v12, %v1679_v7  ;;  %v2176_v26 = vadd.f32 %v2123_v22, %v1926_v1  ;;  %v2230_v30 = vmul.f32 %v3679_v34, %v2178_v13 }
 0x150   :  { %v2264_v53 = vmax.f32 %v2249_v36, 0.0  ;;  %v1876_v15 = vpop.f32.mrf.mxu1  ;;  %v2126_v17 = vpop.f32.mrf.mxu0 }
 0x151   :  { %v2262_v54 = vmax.f32 %v2247_v40, 0.0  ;;  %v1927_v6 = vadd.f32 %v1876_v15, %v1677_v9  ;;  %v2228_v20 = vmul.f32 %v3679_v34, %v2176_v26  ;;  %v2179_v55 = vadd.f32 %v2987_v43, %v1929_v58 }
 0x152   :  { %v2699_v50 = vpack.c.bf16 %v2264_v53, %v2263_v2  ;;  %v2970_v16 = vpop.f32.mrf.mxu1  ;;  %v2990_v56 = vpop.f32.mrf.mxu0  ;;  %v2252_v23 = vadd.f32 %v3696_v51, %v2230_v30 }
 0x153   :  { %v2694_v19 = vpack.c.bf16 %v2262_v54, %v2261_v41  ;;  %v1932_v42 = vadd.f32 %v2970_v16, %v1917_v62  ;;  %v2231_v25 = vmul.f32 %v3679_v34, %v2179_v55  ;;  %v2177_v52 = vadd.f32 %v2126_v17, %v1927_v6 }
 0x154   :  { %2718 = vst [vmem:[#allocation3 + $0x18] sm:$0xff] %v2699_v50   ;;  %v1889_v60 = vpop.f32.mrf.mxu1  ;;  %v2139_v57 = vpop.f32.mrf.mxu0  ;;  %v2250_v39 = vadd.f32 %v3696_v51, %v2228_v20  ;;  %v2267_v31 = vmax.f32 %v2252_v23, 0.0 }
 0x155   :  { %2717 = vst [vmem:[#allocation3 + $0x10] sm:$0xff] %v2694_v19   ;;  %1947 = vst [vmem:[#allocation2 + $0x28] sm:$0xf] %v1932_v42  ;;  %v1930_v63 = vadd.f32 %v1889_v60, %v1680_v38  ;;  %v2253_v4 = vadd.f32 %v3696_v51, %v2231_v25  ;;  %v2229_v37 = vmul.f32 %v3679_v34, %v2177_v52 }
 0x156   :  { %v2971_v10 = vpop.f32.mrf.mxu1  ;;  %v2991_v21 = vpop.f32.mrf.mxu0  ;;  %v2265_v59 = vmax.f32 %v2250_v39, 0.0 }
 0x157   :  { %v2180_v28 = vadd.f32 %v2139_v57, %v1930_v63  ;;  %v2268_v61 = vmax.f32 %v2253_v4, 0.0  ;;  %v2251_v3 = vadd.f32 %v3696_v51, %v2229_v37 }
 0x158   :  { %v1892_v14 = vpop.f32.mrf.mxu1  ;;  %v2142_v18 = vpop.f32.mrf.mxu0 }
 0x159   :  { %v1931_v24 = vadd.f32 %v1892_v14, %v1681_v46  ;;  %v2232_v8 = vmul.f32 %v3679_v34, %v2180_v28  ;;  %v2709_v33 = vpack.c.bf16 %v2268_v61, %v2267_v31  ;;  %v2266_v7 = vmax.f32 %v2251_v3, 0.0 }
 0x15b   :  { %v2181_v11 = vadd.f32 %v2142_v18, %v1931_v24  ;;  %2720 = vst [vmem:[#allocation3 + $0x28] sm:$0xff] %v2709_v33   ;;  %v2704_v5 = vpack.c.bf16 %v2266_v7, %v2265_v59  ;;  %v2254_v44 = vadd.f32 %v3696_v51, %v2232_v8 }
 0x15c   :  { %v2167_v47 = vld [vmem:[#allocation2 + $0x28] sm:$0xf] }
 0x15d   :  { %v2182_v48 = vadd.f32 %v2990_v56, %v2167_v47  ;;  %v2233_v22 = vmul.f32 %v3679_v34, %v2181_v11  ;;  %2719 = vst [vmem:[#allocation3 + $0x20] sm:$0xff] %v2704_v5   ;;  %v2269_v1 = vmax.f32 %v2254_v44, 0.0 }
 0x15f   :  { %2197 = vst [vmem:[#allocation2 + $0x28] sm:$0xf] %v2182_v48  ;;  %v2255_v27 = vadd.f32 %v3696_v51, %v2233_v22 }
 0x161   :  { %v2270_v29 = vmax.f32 %v2255_v27, 0.0 }
 0x163   :  { %v2714_v13 = vpack.c.bf16 %v2270_v29, %v2269_v1 }
 0x165   :  { %2721 = vst [vmem:[#allocation3 + $0x30] sm:$0xff] %v2714_v13  }
 0x166   :  { %v2212_v32 = vld [vmem:[#allocation2 + $0x28] sm:$0xf] }
 0x167   :  { %v2234_v9 = vmul.f32 %v3679_v34, %v2212_v32 }
 0x169   :  { %v2256_v36 = vadd.f32 %v3696_v51, %v2234_v9 }
 0x16b   :  { %v2271_v12 = vmax.f32 %v2256_v36, 0.0 }
 0x16d   :  { %v2680_v43 = vpack.c.bf16 %v2271_v12, %v2271_v12 }
 0x16f   :  { %2347 = vst [vmem:[#allocation3 + $0x38] sm:$0x3] %v2680_v43 }
 0x170   :  { %3101 = shalt.err (!%p3098_p4)
}
 0x171   :  { %s3114_s15 = smov 64   ;;  %s3115_s16 = smov 4  }
 0x172   :  { %2360 = dma.vmem_to_hbm [thread:$0]  %s2355_s13, 960, %s3761_s4, [#allocation4], %s3114_s15, %s3114_s15, %s3115_s16  }
 0x173   :  { %3110 = dma.done.wait [#allocation4], 960  }
 0x174   :  { %3111 = vsyncadd [#allocation4], 4294966336 }
 0x175   :  { %2364 = vsyncpa [#allocation4], 1 }

</bundles_post_ra>
